<compile_context>
chip_gen: v7x
topology: tpu7x:2x2x1
jax: 0.10.0
libtpu: 0.0.40
codegen_flags: <defaults>
</compile_context>

<pallas_src>
import math

import jax
import jax.numpy as jnp
import numpy as np
from jax.experimental import pallas as pl
from jax.experimental.pallas import tpu as pltpu


# ---------------- Pallas kernel ----------------

def _policy_head_kernel(x_ref, scale_ref, shift_ref, w_ref, b_ref, out_ref):
    """Fused BatchRenorm(eval) -> Mish -> (conv1x1 ∘ fc) matmul + bias.

    x_ref:     (B, K)      K = C*H*W, NCHW-flat activations
    scale_ref: (1, K)      per-channel gamma/std, pre-broadcast over H*W
    shift_ref: (1, K)      per-channel beta - gamma*mean/std, pre-broadcast
    w_ref:     (K, NPAD)   composed conv1x1 @ fc weight, zero-padded to NPAD lanes
    b_ref:     (1, NPAD)   fc bias, zero-padded
    out_ref:   (B, NPAD)
    """
    x = x_ref[...]
    # BatchRenorm2d (eval) folded into one FMA.
    xn = x * scale_ref[...] + shift_ref[...]
    # Mish: x * tanh(softplus(x)), one exp instead of exp + log1p + tanh.
    u = jnp.exp(jnp.minimum(xn, 20.0))
    p = u * (u + 2.0)
    act = xn * (p / (p + 2.0))
    # Single MXU matmul (K = C*H*W) + bias; output last dim is a multiple of 128.
    out_ref[...] = (
        jnp.dot(act, w_ref[...], preferred_element_type=jnp.float32) + b_ref[...]
    )


def policy_head_pallas(x_nchw, params):
    """x_nchw: (B, C, H, W) float32 (PyTorch layout).  Returns (B, H*W) logits."""
    B, C, H, W = x_nchw.shape
    HW = H * W
    K = C * HW
    N = params["fc_w"].shape[0]               # 19*19 = 361
    NPAD = ((N + 127) // 128) * 128           # lane-dense output (384)

    # ---- parameter preprocessing (pure JAX, outside the kernel) ----
    scale = params["gamma"] / params["running_std"]
    shift = params["beta"] - params["gamma"] * params["running_mean"] / params["running_std"]
    scale_flat = jnp.repeat(scale, HW).reshape(1, K)
    shift_flat = jnp.repeat(shift, HW).reshape(1, K)

    # Compose the 1x1 conv (2, C) with the fc weight (N, 2*HW) into one (K, N) map:
    #   w_comb[c*HW + hw, j] = sum_k conv_w[k, c] * fc_w[j, k*HW + hw]
    fc_w3 = params["fc_w"].reshape(N, 2, HW)
    w_comb = jnp.einsum("kc,jkh->chj", params["conv_w"], fc_w3,
                        precision=jax.lax.Precision.HIGHEST).reshape(K, N)
    w_comb = jnp.pad(w_comb, ((0, 0), (0, NPAD - N)))
    b_pad = jnp.pad(params["fc_b"], (0, NPAD - N)).reshape(1, NPAD)

    x_flat = x_nchw.reshape(B, K)             # NCHW flatten: (c, h, w)-major, free reshape

    out = pl.pallas_call(
        _policy_head_kernel,
        out_shape=jax.ShapeDtypeStruct((B, NPAD), jnp.float32),
        grid=(1,),                            # whole batch in one step (tiny workload)
        in_specs=[
            pl.BlockSpec((B, K), lambda i: (0, 0)),
            pl.BlockSpec((1, K), lambda i: (0, 0)),
            pl.BlockSpec((1, K), lambda i: (0, 0)),
            pl.BlockSpec((K, NPAD), lambda i: (0, 0)),
            pl.BlockSpec((1, NPAD), lambda i: (0, 0)),
        ],
        out_specs=pl.BlockSpec((B, NPAD), lambda i: (0, 0)),
        compiler_params=pltpu.CompilerParams(
            dimension_semantics=("parallel",)),
    )(x_flat, scale_flat, shift_flat, w_comb, b_pad)
    return out[:, :N]


# ---------------- parameter init (deterministic, synthetic) ----------------

def init_params(key, channels, board=19):
    n = board * board
    k = jax.random.split(key, 7)
    return {
        "running_mean": 0.1 * jax.random.normal(k[0], (channels,), jnp.float32),
        "running_std":  jax.random.uniform(k[1], (channels,), jnp.float32, 0.8, 1.2),
        "gamma":        1.0 + 0.1 * jax.random.normal(k[2], (channels,), jnp.float32),
        "beta":         0.1 * jax.random.normal(k[3], (channels,), jnp.float32),
        "conv_w":       (1.0 / math.sqrt(channels))
                        * jax.random.normal(k[4], (2, channels), jnp.float32),
        "fc_w":         (1.0 / math.sqrt(2 * n))
                        * jax.random.normal(k[5], (n, 2 * n), jnp.float32),
        "fc_b":         0.1 * jax.random.normal(k[6], (n,), jnp.float32),
    }


# ---------------- pure-JAX reference (mirrors the PyTorch forward) ----------------

def policy_head_ref(x_nchw, params):
    B = x_nchw.shape[0]
    mean = params["running_mean"][None, :, None, None]
    std = params["running_std"][None, :, None, None]
    gamma = params["gamma"][None, :, None, None]
    beta = params["beta"][None, :, None, None]
    # BatchRenorm2d, eval mode.
    xn = gamma * ((x_nchw - mean) / std) + beta
    # Mish.
    act = xn * jnp.tanh(jax.nn.softplus(xn))
    # 1x1 conv, no bias.
    y = jnp.einsum("bchw,kc->bkhw", act, params["conv_w"],
                   precision=jax.lax.Precision.HIGHEST)
    # Flatten (NCHW order) + fc.
    feat = y.reshape(B, -1)
    return jnp.einsum("bi,ji->bj", feat, params["fc_w"],
                      precision=jax.lax.Precision.HIGHEST) + params["fc_b"]


if __name__ == "__main__":
    key = jax.random.PRNGKey(0)
    kx, kp = jax.random.split(key)
    # fc = Linear(2*19*19, 19*19) implies a 19x19 board; small batch/channels.
    B, C, H, W = 2, 4, 19, 19
    x_nchw = jax.random.normal(kx, (B, C, H, W), jnp.float32)
    params = init_params(kp, C, board=H)

    out = jax.block_until_ready(policy_head_pallas(x_nchw, params))
    ref = policy_head_ref(x_nchw, params)
    np.testing.assert_allclose(np.asarray(out), np.asarray(ref),
                               rtol=1e-3, atol=1e-3)
    print("KERNEL_OK")
</pallas_src>

<mosaic_0001>
module attributes {stable_mosaic.version = 11 : i64} {
  func.func @_policy_head_kernel(%arg0: i32, %arg1: memref<2x1444xf32, #tpu.memory_space<vmem>>, %arg2: memref<1x1444xf32, #tpu.memory_space<vmem>>, %arg3: memref<1x1444xf32, #tpu.memory_space<vmem>>, %arg4: memref<1444x384xf32, #tpu.memory_space<vmem>>, %arg5: memref<1x384xf32, #tpu.memory_space<vmem>>, %arg6: memref<2x384xf32, #tpu.memory_space<vmem>>) attributes {dimension_semantics = [#tpu.dimension_semantics<parallel>], iteration_bounds = array<i64: 1>, scalar_prefetch = 0 : i64, scratch_operands = 0 : i64, tpu.core_type = #tpu.core_type<tc>, window_params = [{pipeline_mode = #tpu.pipeline_mode<synchronous>, transform_indices = @transform_0, window_bounds = array<i64: 2, 1444>}, {pipeline_mode = #tpu.pipeline_mode<synchronous>, transform_indices = @transform_1, window_bounds = array<i64: 1, 1444>}, {pipeline_mode = #tpu.pipeline_mode<synchronous>, transform_indices = @transform_2, window_bounds = array<i64: 1, 1444>}, {pipeline_mode = #tpu.pipeline_mode<synchronous>, transform_indices = @transform_3, window_bounds = array<i64: 1444, 384>}, {pipeline_mode = #tpu.pipeline_mode<synchronous>, transform_indices = @transform_4, window_bounds = array<i64: 1, 384>}, {pipeline_mode = #tpu.pipeline_mode<synchronous>, transform_indices = @transform_5, window_bounds = array<i64: 2, 384>}]} {
    %c0 = arith.constant 0 : index
    %c0_0 = arith.constant 0 : index
    %0 = vector.load %arg1[%c0, %c0_0] : memref<2x1444xf32, #tpu.memory_space<vmem>>, vector<2x1444xf32>
    %c0_1 = arith.constant 0 : index
    %c0_2 = arith.constant 0 : index
    %1 = vector.load %arg2[%c0_1, %c0_2] : memref<1x1444xf32, #tpu.memory_space<vmem>>, vector<1x1444xf32>
    %2 = vector.broadcast %1 : vector<1x1444xf32> to vector<2x1444xf32>
    %3 = arith.mulf %0, %2 : vector<2x1444xf32>
    %c0_3 = arith.constant 0 : index
    %c0_4 = arith.constant 0 : index
    %4 = vector.load %arg3[%c0_3, %c0_4] : memref<1x1444xf32, #tpu.memory_space<vmem>>, vector<1x1444xf32>
    %5 = vector.broadcast %4 : vector<1x1444xf32> to vector<2x1444xf32>
    %6 = arith.addf %3, %5 : vector<2x1444xf32>
    %cst = arith.constant 2.000000e+01 : f32
    %7 = vector.broadcast %cst : f32 to vector<2x1444xf32>
    %8 = arith.minimumf %6, %7 : vector<2x1444xf32>
    %9 = math.exp %8 : vector<2x1444xf32>
    %cst_5 = arith.constant 2.000000e+00 : f32
    %10 = vector.broadcast %cst_5 : f32 to vector<2x1444xf32>
    %11 = arith.addf %9, %10 : vector<2x1444xf32>
    %12 = arith.mulf %9, %11 : vector<2x1444xf32>
    %cst_6 = arith.constant 2.000000e+00 : f32
    %13 = vector.broadcast %cst_6 : f32 to vector<2x1444xf32>
    %14 = arith.addf %12, %13 : vector<2x1444xf32>
    %15 = arith.divf %12, %14 : vector<2x1444xf32>
    %16 = arith.mulf %6, %15 : vector<2x1444xf32>
    %c0_7 = arith.constant 0 : index
    %c0_8 = arith.constant 0 : index
    %17 = vector.load %arg4[%c0_7, %c0_8] : memref<1444x384xf32, #tpu.memory_space<vmem>>, vector<1444x384xf32>
    %cst_9 = arith.constant dense<0.000000e+00> : vector<2x384xf32>
    %18 = tpu.matmul %16, %17, %cst_9 {dimension_numbers = #tpu.dot_dimension_numbers<[1], [0], [0], [1], [0, 0, 1, 1], [], []>} : vector<2x1444xf32>, vector<1444x384xf32>, vector<2x384xf32> -> vector<2x384xf32>
    %c0_10 = arith.constant 0 : index
    %c0_11 = arith.constant 0 : index
    %19 = vector.load %arg5[%c0_10, %c0_11] : memref<1x384xf32, #tpu.memory_space<vmem>>, vector<1x384xf32>
    %20 = vector.broadcast %19 : vector<1x384xf32> to vector<2x384xf32>
    %21 = arith.addf %18, %20 : vector<2x384xf32>
    %c0_12 = arith.constant 0 : index
    %c0_13 = arith.constant 0 : index
    %22 = vector.load %arg6[%c0_12, %c0_13] : memref<2x384xf32, #tpu.memory_space<vmem>>, vector<2x384xf32>
    tpu.vector_store %arg6[%c0_12, %c0_13], %21 {strides = array<i32>} : memref<2x384xf32, #tpu.memory_space<vmem>>, vector<2x384xf32>,
    return
  }
  func.func @transform_0(%arg0: i32) -> (i32, i32) {
    %c0_i32 = arith.constant 0 : i32
    %c0_i32_0 = arith.constant 0 : i32
    %c0_i32_1 = arith.constant 0 : i32
    return %c0_i32, %c0_i32_0 : i32, i32
  }
  func.func @transform_1(%arg0: i32) -> (i32, i32) {
    %c0_i32 = arith.constant 0 : i32
    %c0_i32_0 = arith.constant 0 : i32
    %c0_i32_1 = arith.constant 0 : i32
    return %c0_i32, %c0_i32_0 : i32, i32
  }
  func.func @transform_2(%arg0: i32) -> (i32, i32) {
    %c0_i32 = arith.constant 0 : i32
    %c0_i32_0 = arith.constant 0 : i32
    %c0_i32_1 = arith.constant 0 : i32
    return %c0_i32, %c0_i32_0 : i32, i32
  }
  func.func @transform_3(%arg0: i32) -> (i32, i32) {
    %c0_i32 = arith.constant 0 : i32
    %c0_i32_0 = arith.constant 0 : i32
    %c0_i32_1 = arith.constant 0 : i32
    return %c0_i32, %c0_i32_0 : i32, i32
  }
  func.func @transform_4(%arg0: i32) -> (i32, i32) {
    %c0_i32 = arith.constant 0 : i32
    %c0_i32_0 = arith.constant 0 : i32
    %c0_i32_1 = arith.constant 0 : i32
    return %c0_i32, %c0_i32_0 : i32, i32
  }
  func.func @transform_5(%arg0: i32) -> (i32, i32) {
    %c0_i32 = arith.constant 0 : i32
    %c0_i32_0 = arith.constant 0 : i32
    %c0_i32_1 = arith.constant 0 : i32
    return %c0_i32, %c0_i32_0 : i32, i32
  }
}

</mosaic_0001>

<bundles_post_ra>
// kernel: tpu_custom_call.1
= control target key start
LH: loop header
LB: loop body
LE: loop exit
PB: predicated region body
PF: predicated region fallthrough
CT: control target
= control target key end

     0   :  { %10 = vsyncpa [#allocation3], 0  ;;  %s3056_s0 = inlined_call_operand.hbm [shape: f32[2,1444], index: 0, kind: input, shape index: {}]   ;;  %s3057_s1 = inlined_call_operand.hbm [shape: f32[1,1444], index: 1, kind: input, shape index: {}]   ;;  %s3058_s2 = inlined_call_operand.hbm [shape: f32[1,1444], index: 2, kind: input, shape index: {}]   ;;  %s3059_s3 = inlined_call_operand.hbm [shape: f32[1444,384], index: 3, kind: input, shape index: {}]   ;;  %s3060_s4 = inlined_call_operand.hbm [shape: f32[1,384], index: 4, kind: input, shape index: {}]   ;;  %s3061_s5 = inlined_call_operand.hbm [shape: f32[2,384], index: 5, kind: output, shape index: {}]  }
   0x1   :  { %11 = vsyncpa [#allocation6], 0 }
   0x2   :  { %12 = vsyncpa [#allocation9], 0 }
   0x3   :  { %13 = vsyncpa [#allocation4], 0  ;;  %s2756_s18 = smov [#allocation5]   ;;  %s2757_s20 = smov [#allocation8]  }
   0x4   :  { %s30_s19 = sshll.u32 %s2756_s18, 4  ;;  %s49_s21 = sshll.u32 %s2757_s20, 4  ;;  %s31_s19 = int_to_ptr.vmem [resolvable:$true] %s30_s19  ;;  %s2797_s21 = int_to_ptr.vmem [resolvable:$true] %s49_s21 }
   0x5   :  { %s2616_s24 = scalar_lea.hbm %s3057_s1, 192 }
   0x6   :  { %p2617_p0 = scmp.ne.s32.totalorder %s3057_s1, %s2616_s24  ;;  %p2620_p1 = scmp.lt.u32.totalorder %s2616_s24, %s3057_s1 }
   0x8   :  { %p2622_p2 = pnand %p2620_p1, %p2617_p0 }
   0xa   :  { %2625 = shalt.err (!%p2622_p2)
}
   0xb   :  { %s2626_s29 = scalar_lea.vmem %s31_s19, 192  ;;  %p2631_p4 = scmp.lt.s32.totalorder %s31_s19, %s31_s19 }
   0xc   :  { %p2627_p3 = scmp.ne.s32.totalorder %s31_s19, %s2626_s29  ;;  %p2632_p5 = scmp.lt.s32.totalorder %s2626_s29, %s2626_s29 }
   0xe   :  { %p2633_p6 = por %p2632_p5, %p2631_p4 }
  0x10   :  { %p2634_p7 = pnand %p2633_p6, %p2627_p3 }
  0x12   :  { %2637 = shalt.err (!%p2634_p7)
}
  0x13   :  { %33 = dma.hbm_to_vmem [thread:$0]  %s3057_s1, 192, %s31_s19, [#allocation6]  }
  0x14   :  { %s2638_s9 = scalar_lea.hbm %s3059_s3, 69504 }
  0x15   :  { %p2639_p8 = scmp.ne.s32.totalorder %s3059_s3, %s2638_s9  ;;  %p2642_p9 = scmp.lt.u32.totalorder %s2638_s9, %s3059_s3 }
  0x17   :  { %p2644_p10 = pnand %p2642_p9, %p2639_p8 }
  0x19   :  { %2647 = shalt.err (!%p2644_p10)
}
  0x1a   :  { %s2648_s14 = scalar_lea.vmem %s2797_s21, 69504  ;;  %p2653_p12 = scmp.lt.s32.totalorder %s2797_s21, %s2797_s21 }
  0x1b   :  { %p2649_p11 = scmp.ne.s32.totalorder %s2797_s21, %s2648_s14  ;;  %p2654_p13 = scmp.lt.s32.totalorder %s2648_s14, %s2648_s14 }
  0x1d   :  { %p2655_p0 = por %p2654_p13, %p2653_p12 }
  0x1f   :  { %p2656_p1 = pnand %p2655_p0, %p2649_p11 }
  0x21   :  { %2659 = shalt.err (!%p2656_p1)
}
  0x22   :  { %s2758_s1 = smov 384   ;;  %s2759_s15 = smov 24  }
  0x23   :  { %55 = dma.hbm_to_vmem [thread:$0]  %s3059_s3, 69504, %s2797_s21, [#allocation9], %s2758_s1, %s2758_s1, %s2759_s15  }
  0x24   :  { %s2760_s18 = smov [#allocation2]   ;;  %s2761_s20 = smov [#allocation7]  }
  0x25   :  { %s20_s19 = sshll.u32 %s2760_s18, 4  ;;  %s40_s22 = sshll.u32 %s2761_s20, 4  ;;  %s21_s19 = int_to_ptr.vmem [resolvable:$true] %s20_s19  ;;  %s41_s22 = int_to_ptr.vmem [resolvable:$true] %s40_s22 }
  0x26   :  { %s2660_s25 = scalar_lea.hbm %s3056_s0, 384 }
  0x27   :  { %p2661_p2 = scmp.ne.s32.totalorder %s3056_s0, %s2660_s25  ;;  %p2664_p3 = scmp.lt.u32.totalorder %s2660_s25, %s3056_s0 }
  0x29   :  { %p2666_p4 = pnand %p2664_p3, %p2661_p2 }
  0x2b   :  { %2669 = shalt.err (!%p2666_p4)
}
  0x2c   :  { %s2670_s3 = scalar_lea.vmem %s21_s19, 384  ;;  %p2675_p6 = scmp.lt.s32.totalorder %s21_s19, %s21_s19 }
  0x2d   :  { %p2671_p5 = scmp.ne.s32.totalorder %s21_s19, %s2670_s3  ;;  %p2676_p7 = scmp.lt.s32.totalorder %s2670_s3, %s2670_s3 }
  0x2f   :  { %p2677_p8 = por %p2676_p7, %p2675_p6 }
  0x31   :  { %p2678_p9 = pnand %p2677_p8, %p2671_p5 }
  0x33   :  { %2681 = shalt.err (!%p2678_p9)
}
  0x34   :  { %23 = dma.hbm_to_vmem [thread:$0]  %s3056_s0, 384, %s21_s19, [#allocation3]  }
  0x35   :  { %s2682_s8 = scalar_lea.hbm %s3058_s2, 192 }
  0x36   :  { %p2683_p10 = scmp.ne.s32.totalorder %s3058_s2, %s2682_s8  ;;  %p2686_p11 = scmp.lt.u32.totalorder %s2682_s8, %s3058_s2 }
  0x38   :  { %p2688_p12 = pnand %p2686_p11, %p2683_p10 }
  0x3a   :  { %2691 = shalt.err (!%p2688_p12)
}
  0x3b   :  { %s2692_s13 = scalar_lea.vmem %s41_s22, 192  ;;  %p2697_p0 = scmp.lt.s32.totalorder %s41_s22, %s41_s22 }
  0x3c   :  { %p2693_p13 = scmp.ne.s32.totalorder %s41_s22, %s2692_s13  ;;  %p2698_p1 = scmp.lt.s32.totalorder %s2692_s13, %s2692_s13 }
  0x3e   :  { %p2699_p2 = por %p2698_p1, %p2697_p0 }
  0x40   :  { %p2700_p3 = pnand %p2699_p2, %p2693_p13 }
  0x42   :  { %2703 = shalt.err (!%p2700_p3)
}
  0x43   :  { %43 = dma.hbm_to_vmem [thread:$0]  %s3058_s2, 192, %s41_s22, [#allocation6]  }
  0x44   :  { %s2762_s1 = smov [#allocation10]   ;;  %s2704_s18 = scalar_lea.hbm %s3060_s4, 48 }
  0x45   :  { %s62_s15 = sshll.u32 %s2762_s1, 4  ;;  %p2705_p4 = scmp.ne.s32.totalorder %s3060_s4, %s2704_s18  ;;  %s63_s15 = int_to_ptr.vmem [resolvable:$true] %s62_s15 }
  0x46   :  { %p2708_p5 = scmp.lt.u32.totalorder %s2704_s18, %s3060_s4 }
  0x48   :  { %p2710_p6 = pnand %p2708_p5, %p2705_p4 }
  0x4a   :  { %2713 = shalt.err (!%p2710_p6)
}
  0x4b   :  { %s2714_s25 = scalar_lea.vmem %s63_s15, 48  ;;  %s2718_s2 = scalar_lea.vmem %s63_s15, 64 }
  0x4c   :  { %p2715_p7 = scmp.ne.s32.totalorder %s63_s15, %s2714_s25  ;;  %p2719_p8 = scmp.lt.s32.totalorder %s63_s15, %s63_s15 }
  0x4d   :  { %p2720_p9 = scmp.lt.s32.totalorder %s2718_s2, %s2714_s25 }
  0x4f   :  { %p2721_p10 = por %p2720_p9, %p2719_p8 }
  0x51   :  { %p2722_p11 = pnand %p2721_p10, %p2715_p7 }
  0x53   :  { %2725 = shalt.err (!%p2722_p11)
}
  0x54   :  { %65 = dma.hbm_to_vmem [thread:$0]  %s3060_s4, 48, %s63_s15, [#allocation9]  }
  0x55   :  { %2748 = dma.done.wait [#allocation3], 384  }
  0x56   :  { %2749 = vsyncadd [#allocation3], 4294966912 }
  0x57   :  { %2750 = dma.done.wait [#allocation6], 384  }
  0x58   :  { %2751 = vsyncadd [#allocation6], 4294966912 }
  0x59   :  { %2752 = dma.done.wait [#allocation9], 69552  }
  0x5a   :  { %2753 = vsyncadd [#allocation9], 4294897744  ;;  %v330_v0 = vld [vmem:[#allocation8 + $0x8] sm:$0xff]  ;;  %v333_v1 = vld [vmem:[#allocation8 + $0x20] sm:$0xff]  ;;  %vm954_vm0 = vcmask 293888   ;;  %vm957_vm1 = vcmask 1043456  }
  0x5b   :  { %v426_v2 = vld [vmem:[#allocation8 + $0x308] sm:$0xff]  ;;  %v2031_v3 = vpack.c.bf16 %v333_v1, %v330_v0  ;;  %v429_v4 = vld [vmem:[#allocation8 + $0x320] sm:$0xff]  ;;  %v332_v6 = vld [vmem:[#allocation8 + $0x18] sm:$0xff]  ;;  %s2766_s4 = smov [#allocation11]  }
  0x5c   :  { %v329_v5 = vld [vmem:[#allocation8] sm:$0xff]  ;;  %v2095_v7 = vpack.c.bf16 %v429_v4, %v426_v2  ;;  %v428_v10 = vld [vmem:[#allocation8 + $0x318] sm:$0xff]  ;;  %v339_v13 = vld [vmem:[#allocation8 + $0x50] sm:$0xff]  ;;  %s1840_s27 = sshll.u32 %s2766_s4, 4  ;;  %s1841_s27 = int_to_ptr.vmem [resolvable:$true] %s1840_s27 }
  0x5d   :  { %v2033_v8 = vpack.c.bf16 %v332_v6, %v329_v5  ;;  %v425_v9 = vld [vmem:[#allocation8 + $0x300] sm:$0xff]  ;;  %v336_v11 = vld [vmem:[#allocation8 + $0x38] sm:$0xff]  ;;  %2032 = vmatprep.subr.bf16.mxu1 %v2031_v3  ;;  %v435_v15 = vld [vmem:[#allocation8 + $0x350] sm:$0xff]  ;;  %s2726_s28 = scalar_lea.vmem %s1841_s27, 96  ;;  %p2731_p13 = scmp.lt.s32.totalorder %s1841_s27, %s1841_s27 }
  0x5e   :  { %v2097_v12 = vpack.c.bf16 %v428_v10, %v425_v9  ;;  %v432_v14 = vld [vmem:[#allocation8 + $0x338] sm:$0xff]  ;;  %2096 = vmatprep.subr.bf16.mxu0 %v2095_v7  ;;  %v2035_v16 = vpack.c.bf16 %v339_v13, %v336_v11  ;;  %v335_v18 = vld [vmem:[#allocation8 + $0x30] sm:$0xff]  ;;  %v338_v19 = vld [vmem:[#allocation8 + $0x48] sm:$0xff]  ;;  %p2727_p12 = scmp.ne.s32.totalorder %s1841_s27, %s2726_s28  ;;  %p2732_p0 = scmp.lt.s32.totalorder %s2726_s28, %s2726_s28 }
  0x5f   :  { %2034 = vmatpush1.bf16.msra.mxu1 %v2033_v8  ;;  %v2099_v17 = vpack.c.bf16 %v435_v15, %v432_v14  ;;  %v431_v20 = vld [vmem:[#allocation8 + $0x330] sm:$0xff]  ;;  %v2037_v21 = vpack.c.bf16 %v338_v19, %v335_v18  ;;  %v434_v22 = vld [vmem:[#allocation8 + $0x348] sm:$0xff]  ;;  %v345_v24 = vld [vmem:[#allocation8 + $0x80] sm:$0xff] }
  0x60   :  { %2098 = vmatpush1.bf16.msra.mxu0 %v2097_v12  ;;  %v342_v23 = vld [vmem:[#allocation8 + $0x68] sm:$0xff]  ;;  %2036 = vmatprep.subr.bf16.mxu1 %v2035_v16  ;;  %v2101_v25 = vpack.c.bf16 %v434_v22, %v431_v20  ;;  %v441_v28 = vld [vmem:[#allocation8 + $0x380] sm:$0xff]  ;;  %v344_v31 = vld [vmem:[#allocation8 + $0x78] sm:$0xff]  ;;  %p2733_p1 = por %p2732_p0, %p2731_p13 }
  0x61   :  { %2100 = vmatprep.subr.bf16.mxu0 %v2099_v17  ;;  %v2039_v26 = vpack.c.bf16 %v345_v24, %v342_v23  ;;  %v438_v27 = vld [vmem:[#allocation8 + $0x368] sm:$0xff]  ;;  %v341_v29 = vld [vmem:[#allocation8 + $0x60] sm:$0xff]  ;;  %v440_v33 = vld [vmem:[#allocation8 + $0x378] sm:$0xff] }
  0x62   :  { %v2103_v30 = vpack.c.bf16 %v441_v28, %v438_v27  ;;  %v437_v32 = vld [vmem:[#allocation8 + $0x360] sm:$0xff]  ;;  %v2041_v34 = vpack.c.bf16 %v344_v31, %v341_v29  ;;  %v348_v35 = vld [vmem:[#allocation8 + $0x98] sm:$0xff]  ;;  %v351_v36 = vld [vmem:[#allocation8 + $0xb0] sm:$0xff]  ;;  %p2734_p2 = pnand %p2733_p1, %p2727_p12 }
  0x63   :  { %2038 = vmatpush1.bf16.msra.mxu1 %v2037_v21  ;;  %v444_v37 = vld [vmem:[#allocation8 + $0x398] sm:$0xff]  ;;  %v2105_v38 = vpack.c.bf16 %v440_v33, %v437_v32  ;;  %v2043_v39 = vpack.c.bf16 %v351_v36, %v348_v35  ;;  %v447_v40 = vld [vmem:[#allocation8 + $0x3b0] sm:$0xff]  ;;  %v350_v42 = vld [vmem:[#allocation8 + $0xa8] sm:$0xff] }
  0x64   :  { %2102 = vmatpush1.bf16.msra.mxu0 %v2101_v25  ;;  %2040 = vmatprep.subr.bf16.mxu1 %v2039_v26  ;;  %v347_v41 = vld [vmem:[#allocation8 + $0x90] sm:$0xff]  ;;  %v2107_v43 = vpack.c.bf16 %v447_v40, %v444_v37  ;;  %v446_v45 = vld [vmem:[#allocation8 + $0x3a8] sm:$0xff]  ;;  %v357_v47 = vld [vmem:[#allocation8 + $0xe0] sm:$0xff] }
  0x65   :  { %2104 = vmatprep.subr.bf16.mxu0 %v2103_v30  ;;  %v443_v44 = vld [vmem:[#allocation8 + $0x390] sm:$0xff]  ;;  %v354_v46 = vld [vmem:[#allocation8 + $0xc8] sm:$0xff]  ;;  %v453_v49 = vld [vmem:[#allocation8 + $0x3e0] sm:$0xff]  ;;  %v2045_v50 = vpack.c.bf16 %v350_v42, %v347_v41 }
  0x66   :  { %v450_v48 = vld [vmem:[#allocation8 + $0x3c8] sm:$0xff]  ;;  %v2109_v51 = vpack.c.bf16 %v446_v45, %v443_v44  ;;  %v2047_v52 = vpack.c.bf16 %v357_v47, %v354_v46  ;;  %v353_v53 = vld [vmem:[#allocation8 + $0xc0] sm:$0xff]  ;;  %v356_v54 = vld [vmem:[#allocation8 + $0xd8] sm:$0xff]  ;;  %v88_v46 = vlaneseq }
  0x67   :  { %2042 = vmatpush1.bf16.msra.mxu1 %v2041_v34  ;;  %v449_v55 = vld [vmem:[#allocation8 + $0x3c0] sm:$0xff]  ;;  %v2111_v56 = vpack.c.bf16 %v453_v49, %v450_v48  ;;  %v452_v57 = vld [vmem:[#allocation8 + $0x3d8] sm:$0xff]  ;;  %v363_v59 = vld [vmem:[#allocation8 + $0x110] sm:$0xff]  ;;  %v2049_v62 = vpack.c.bf16 %v356_v54, %v353_v53 }
  0x68   :  { %2106 = vmatpush1.bf16.msra.mxu0 %v2105_v38  ;;  %2044 = vmatprep.subr.bf16.mxu1 %v2043_v39  ;;  %v360_v58 = vld [vmem:[#allocation8 + $0xf8] sm:$0xff]  ;;  %v459_v61 = vld [vmem:[#allocation8 + $0x410] sm:$0xff]  ;;  %v2113_v63 = vpack.c.bf16 %v452_v57, %v449_v55  ;;  %v362_v2 = vld [vmem:[#allocation8 + $0x108] sm:$0xff] }
  0x69   :  { %2108 = vmatprep.subr.bf16.mxu0 %v2107_v43  ;;  %v456_v60 = vld [vmem:[#allocation8 + $0x3f8] sm:$0xff]  ;;  %v2051_v0 = vpack.c.bf16 %v363_v59, %v360_v58  ;;  %v359_v1 = vld [vmem:[#allocation8 + $0xf0] sm:$0xff]  ;;  %v458_v5 = vld [vmem:[#allocation8 + $0x408] sm:$0xff]  ;;  %v2864_v59 = vshrl.u32 %v88_v46, 7 }
  0x6a   :  { %v455_v3 = vld [vmem:[#allocation8 + $0x3f0] sm:$0xff]  ;;  %v2115_v4 = vpack.c.bf16 %v459_v61, %v456_v60  ;;  %v366_v6 = vld [vmem:[#allocation8 + $0x128] sm:$0xff]  ;;  %v369_v7 = vld [vmem:[#allocation8 + $0x140] sm:$0xff]  ;;  %v2053_v10 = vpack.c.bf16 %v362_v2, %v359_v1  ;;  %v2763_v60 = vmov 1983009808  }
  0x6b   :  { %2046 = vmatpush1.bf16.msra.mxu1 %v2045_v50  ;;  %v462_v8 = vld [vmem:[#allocation8 + $0x428] sm:$0xff]  ;;  %v465_v9 = vld [vmem:[#allocation8 + $0x440] sm:$0xff]  ;;  %v2117_v11 = vpack.c.bf16 %v458_v5, %v455_v3  ;;  %v2055_v12 = vpack.c.bf16 %v369_v7, %v366_v6  ;;  %v368_v14 = vld [vmem:[#allocation8 + $0x138] sm:$0xff]  ;;  %v139_v61 = vunpack.c.l.s4 %v2763_v60 }
  0x6c   :  { %2110 = vmatpush1.bf16.msra.mxu0 %v2109_v51  ;;  %2048 = vmatprep.subr.bf16.mxu1 %v2047_v52  ;;  %v365_v13 = vld [vmem:[#allocation8 + $0x120] sm:$0xff]  ;;  %v2119_v16 = vpack.c.bf16 %v465_v9, %v462_v8  ;;  %v464_v17 = vld [vmem:[#allocation8 + $0x438] sm:$0xff]  ;;  %v375_v19 = vld [vmem:[#allocation8 + $0x170] sm:$0xff] }
  0x6d   :  { %2112 = vmatprep.subr.bf16.mxu0 %v2111_v56  ;;  %v461_v15 = vld [vmem:[#allocation8 + $0x420] sm:$0xff]  ;;  %v372_v18 = vld [vmem:[#allocation8 + $0x158] sm:$0xff]  ;;  %v471_v21 = vld [vmem:[#allocation8 + $0x470] sm:$0xff]  ;;  %v2057_v22 = vpack.c.bf16 %v368_v14, %v365_v13  ;;  %v2867_v13 = vsub.s32 0, %v2864_v59  ;;  %v140_v14 = vunpack.c.0.s8 %v139_v61 }
  0x6e   :  { %v468_v20 = vld [vmem:[#allocation8 + $0x458] sm:$0xff]  ;;  %v2121_v23 = vpack.c.bf16 %v464_v17, %v461_v15  ;;  %v2059_v24 = vpack.c.bf16 %v375_v19, %v372_v18  ;;  %v371_v25 = vld [vmem:[#allocation8 + $0x150] sm:$0xff]  ;;  %v374_v26 = vld [vmem:[#allocation8 + $0x168] sm:$0xff]  ;;  %v2870_v19 = vsub.s32 1, %v2864_v59 }
  0x6f   :  { %2050 = vmatpush1.bf16.msra.mxu1 %v2049_v62  ;;  %v467_v27 = vld [vmem:[#allocation8 + $0x450] sm:$0xff]  ;;  %v2123_v28 = vpack.c.bf16 %v471_v21, %v468_v20  ;;  %v470_v29 = vld [vmem:[#allocation8 + $0x468] sm:$0xff]  ;;  %v381_v31 = vld [vmem:[#allocation8 + $0x1a0] sm:$0xff]  ;;  %v2061_v34 = vpack.c.bf16 %v374_v26, %v371_v25  ;;  %v2873_v20 = vsub.s32 2, %v2864_v59  ;;  %v2876_v21 = vsub.s32 3, %v2864_v59 }
  0x70   :  { %2114 = vmatpush1.bf16.msra.mxu0 %v2113_v63  ;;  %2052 = vmatprep.subr.bf16.mxu1 %v2051_v0  ;;  %v378_v30 = vld [vmem:[#allocation8 + $0x188] sm:$0xff]  ;;  %v477_v33 = vld [vmem:[#allocation8 + $0x4a0] sm:$0xff]  ;;  %v2125_v35 = vpack.c.bf16 %v470_v29, %v467_v27  ;;  %v380_v38 = vld [vmem:[#allocation8 + $0x198] sm:$0xff] }
  0x71   :  { %2116 = vmatprep.subr.bf16.mxu0 %v2115_v4  ;;  %v474_v32 = vld [vmem:[#allocation8 + $0x488] sm:$0xff]  ;;  %v2063_v36 = vpack.c.bf16 %v381_v31, %v378_v30  ;;  %v377_v37 = vld [vmem:[#allocation8 + $0x180] sm:$0xff]  ;;  %v476_v41 = vld [vmem:[#allocation8 + $0x498] sm:$0xff]  ;;  %v2881_v31 = vsub.s32 %v140_v14, %v2864_v59 }
  0x72   :  { %v473_v39 = vld [vmem:[#allocation8 + $0x480] sm:$0xff]  ;;  %v2127_v40 = vpack.c.bf16 %v477_v33, %v474_v32  ;;  %v384_v42 = vld [vmem:[#allocation8 + $0x1b8] sm:$0xff]  ;;  %v387_v43 = vld [vmem:[#allocation8 + $0x1d0] sm:$0xff]  ;;  %v2065_v47 = vpack.c.bf16 %v380_v38, %v377_v37 }
  0x73   :  { %2054 = vmatpush1.bf16.msra.mxu1 %v2053_v10  ;;  %v480_v44 = vld [vmem:[#allocation8 + $0x4b8] sm:$0xff]  ;;  %v483_v45 = vld [vmem:[#allocation8 + $0x4d0] sm:$0xff]  ;;  %v2129_v48 = vpack.c.bf16 %v476_v41, %v473_v39  ;;  %v2067_v49 = vpack.c.bf16 %v387_v43, %v384_v42  ;;  %v386_v51 = vld [vmem:[#allocation8 + $0x1c8] sm:$0xff] }
  0x74   :  { %2118 = vmatpush1.bf16.msra.mxu0 %v2117_v11  ;;  %2056 = vmatprep.subr.bf16.mxu1 %v2055_v12  ;;  %v383_v50 = vld [vmem:[#allocation8 + $0x1b0] sm:$0xff]  ;;  %v2131_v53 = vpack.c.bf16 %v483_v45, %v480_v44  ;;  %v482_v54 = vld [vmem:[#allocation8 + $0x4c8] sm:$0xff]  ;;  %v393_v56 = vld [vmem:[#allocation8 + $0x200] sm:$0xff] }
  0x75   :  { %2120 = vmatprep.subr.bf16.mxu0 %v2119_v16  ;;  %v479_v52 = vld [vmem:[#allocation8 + $0x4b0] sm:$0xff]  ;;  %v390_v55 = vld [vmem:[#allocation8 + $0x1e8] sm:$0xff]  ;;  %v489_v58 = vld [vmem:[#allocation8 + $0x500] sm:$0xff]  ;;  %v2069_v62 = vpack.c.bf16 %v386_v51, %v383_v50 }
  0x76   :  { %v486_v57 = vld [vmem:[#allocation8 + $0x4e8] sm:$0xff]  ;;  %v389_v63 = vld [vmem:[#allocation8 + $0x1e0] sm:$0xff]  ;;  %v392_v0 = vld [vmem:[#allocation8 + $0x1f8] sm:$0xff]  ;;  %v2133_v1 = vpack.c.bf16 %v482_v54, %v479_v52  ;;  %v2071_v2 = vpack.c.bf16 %v393_v56, %v390_v55 }
  0x77   :  { %2058 = vmatpush1.bf16.msra.mxu1 %v2057_v22  ;;  %v485_v3 = vld [vmem:[#allocation8 + $0x4e0] sm:$0xff]  ;;  %v488_v4 = vld [vmem:[#allocation8 + $0x4f8] sm:$0xff]  ;;  %v2135_v6 = vpack.c.bf16 %v489_v58, %v486_v57  ;;  %v399_v7 = vld [vmem:[#allocation8 + $0x230] sm:$0xff]  ;;  %v2073_v15 = vpack.c.bf16 %v392_v0, %v389_v63 }
  0x78   :  { %2122 = vmatpush1.bf16.msra.mxu0 %v2121_v23  ;;  %2060 = vmatprep.subr.bf16.mxu1 %v2059_v24  ;;  %v396_v5 = vld [vmem:[#allocation8 + $0x218] sm:$0xff]  ;;  %v495_v9 = vld [vmem:[#allocation8 + $0x530] sm:$0xff]  ;;  %v398_v11 = vld [vmem:[#allocation8 + $0x228] sm:$0xff]  ;;  %v2137_v22 = vpack.c.bf16 %v488_v4, %v485_v3 }
  0x79   :  { %2124 = vmatprep.subr.bf16.mxu0 %v2123_v28  ;;  %v492_v8 = vld [vmem:[#allocation8 + $0x518] sm:$0xff]  ;;  %v395_v10 = vld [vmem:[#allocation8 + $0x210] sm:$0xff]  ;;  %v494_v16 = vld [vmem:[#allocation8 + $0x528] sm:$0xff]  ;;  %v2075_v23 = vpack.c.bf16 %v399_v7, %v396_v5 }
  0x7a   :  { %v491_v12 = vld [vmem:[#allocation8 + $0x510] sm:$0xff]  ;;  %v402_v17 = vld [vmem:[#allocation8 + $0x248] sm:$0xff]  ;;  %v405_v18 = vld [vmem:[#allocation8 + $0x260] sm:$0xff]  ;;  %v2139_v24 = vpack.c.bf16 %v495_v9, %v492_v8  ;;  %v2077_v26 = vpack.c.bf16 %v398_v11, %v395_v10 }
  0x7b   :  { %2062 = vmatpush1.bf16.msra.mxu1 %v2061_v34  ;;  %v498_v25 = vld [vmem:[#allocation8 + $0x548] sm:$0xff]  ;;  %v2141_v27 = vpack.c.bf16 %v494_v16, %v491_v12  ;;  %v2079_v28 = vpack.c.bf16 %v405_v18, %v402_v17  ;;  %v501_v29 = vld [vmem:[#allocation8 + $0x560] sm:$0xff]  ;;  %v2883_v32 = vld [vmem:[#allocation7] sm:$0xff] }
  0x7c   :  { %2126 = vmatpush1.bf16.msra.mxu0 %v2125_v35  ;;  %2064 = vmatprep.subr.bf16.mxu1 %v2063_v36  ;;  %v2878_v30 = vld [vmem:[#allocation5] sm:$0xff]  ;;  %v401_v37 = vld [vmem:[#allocation8 + $0x240] sm:$0xff]  ;;  %v404_v38 = vld [vmem:[#allocation8 + $0x258] sm:$0xff]  ;;  %v204_v41 = vrot.slane %v2883_v32, %v2870_v19  ;;  %v208_v42 = vrot.slane %v2883_v32, %v2873_v20  ;;  %v2143_v43 = vpack.c.bf16 %v501_v29, %v498_v25 }
  0x7d   :  { %2128 = vmatprep.subr.bf16.mxu0 %v2127_v40  ;;  %v91_v33 = vrot.slane %v2878_v30, %v2867_v13  ;;  %v95_v34 = vrot.slane %v2878_v30, %v2870_v19  ;;  %v99_v35 = vrot.slane %v2878_v30, %v2873_v20  ;;  %v103_v36 = vrot.slane %v2878_v30, %v2876_v21  ;;  %v497_v39 = vld [vmem:[#allocation8 + $0x540] sm:$0xff]  ;;  %v500_v44 = vld [vmem:[#allocation8 + $0x558] sm:$0xff]  ;;  %v411_v46 = vld [vmem:[#allocation8 + $0x290] sm:$0xff] }
  0x7e   :  { %v200_v40 = vrot.slane %v2883_v32, %v2867_v13  ;;  %v408_v45 = vld [vmem:[#allocation8 + $0x278] sm:$0xff]  ;;  %v507_v51 = vld [vmem:[#allocation8 + $0x590] sm:$0xff]  ;;  %v2145_v58 = vpack.c.bf16 %v500_v44, %v497_v39  ;;  %v410_v61 = vld [vmem:[#allocation8 + $0x288] sm:$0xff] }
  0x7f   :  { %2066 = vmatpush1.bf16.msra.mxu1 %v2065_v47  ;;  %v136_v47 = vcombine.low %v91_v33, %v95_v34  ;;  %v504_v50 = vld [vmem:[#allocation8 + $0x578] sm:$0xff]  ;;  %v407_v54 = vld [vmem:[#allocation8 + $0x270] sm:$0xff]  ;;  %v2083_v60 = vpack.c.bf16 %v411_v46, %v408_v45  ;;  %v414_v3 = vld [vmem:[#allocation8 + $0x2a8] sm:$0xff] }
  0x80   :  { %2130 = vmatpush1.bf16.msra.mxu0 %v2129_v48  ;;  %2068 = vmatprep.subr.bf16.mxu1 %v2067_v49  ;;  %v137_v48 = vcombine.low %v99_v35, %v103_v36  ;;  %v212_v49 = vrot.slane %v2883_v32, %v2876_v21  ;;  %v245_v52 = vcombine.low %v200_v40, %v204_v41  ;;  %v81_v63 = vld [vmem:[#allocation2] sm:$0xff]  ;;  %v417_v4 = vld [vmem:[#allocation8 + $0x2c0] sm:$0xff]  ;;  %v510_v7 = vld [vmem:[#allocation8 + $0x5a8] sm:$0xff] }
  0x81   :  { %2132 = vmatprep.subr.bf16.mxu0 %v2131_v53  ;;  %v2081_v53 = vpack.c.bf16 %v404_v38, %v401_v37  ;;  %v144_v55 = vrot.slane %v136_v47, %v2881_v31  ;;  %v513_v8 = vld [vmem:[#allocation8 + $0x5c0] sm:$0xff]  ;;  %v2085_v9 = vpack.c.bf16 %v410_v61, %v407_v54  ;;  %v2087_v14 = vpack.c.bf16 %v417_v4, %v414_v3  ;;  %v416_v16 = vld [vmem:[#allocation8 + $0x2b8] sm:$0xff]  ;;  %v419_v35 = vld [vmem:[#allocation8 + $0x2d0] sm:$0xff] }
  0x82   :  { %v151_v56 = vrot.slane %v137_v48, %v2881_v31  ;;  %v246_v57 = vcombine.low %v208_v42, %v212_v49  ;;  %v253_v0 = vrot.slane %v245_v52, %v2881_v31  ;;  %v509_v17 = vld [vmem:[#allocation8 + $0x5a0] sm:$0xff]  ;;  %v2151_v18 = vpack.c.bf16 %v513_v8, %v510_v7  ;;  %v422_v36 = vld [vmem:[#allocation8 + $0x2e8] sm:$0xff]  ;;  %v515_v37 = vld [vmem:[#allocation8 + $0x5d0] sm:$0xff] }
  0x83   :  { %2070 = vmatpush1.bf16.msra.mxu1 %v2069_v62  ;;  %v503_v62 = vld [vmem:[#allocation8 + $0x570] sm:$0xff]  ;;  %v518_v39 = vld [vmem:[#allocation8 + $0x5e8] sm:$0xff]  ;;  %v525_v44 = vld [vmem:[#allocation8 + $0x620] sm:$0xff]  ;;  %v2093_v45 = vpack.c.bf16 %v422_v36, %v419_v35  ;;  %v106_v49 = vsub.s32 4, %v2864_v59  ;;  %v118_v52 = vsub.s32 7, %v2864_v59 }
  0x84   :  { %2134 = vmatpush1.bf16.msra.mxu0 %v2133_v1  ;;  %2072 = vmatprep.subr.bf16.mxu1 %v2071_v2  ;;  %v2147_v1 = vpack.c.bf16 %v507_v51, %v504_v50  ;;  %v506_v2 = vld [vmem:[#allocation8 + $0x588] sm:$0xff]  ;;  %v152_v5 = vcombine.low %v144_v55, %v151_v56  ;;  %v379_v41 = vld [vmem:[#allocation8 + $0x190] sm:$0xff]  ;;  %v2157_v46 = vpack.c.bf16 %v518_v39, %v515_v37  ;;  %v110_v50 = vsub.s32 5, %v2864_v59  ;;  %v528_v35 = vld [vmem:[#allocation8 + $0x638] sm:$0xff] }
  0x85   :  { %2136 = vmatprep.subr.bf16.mxu0 %v2135_v6  ;;  %v260_v6 = vrot.slane %v246_v57, %v2881_v31  ;;  %v2149_v12 = vpack.c.bf16 %v506_v2, %v503_v62  ;;  %v382_v42 = vld [vmem:[#allocation8 + $0x1a8] sm:$0xff]  ;;  %v114_v51 = vsub.s32 6, %v2864_v59  ;;  %v107_v54 = vrot.slane %v2878_v30, %v106_v49  ;;  %v531_v36 = vld [vmem:[#allocation8 + $0x650] sm:$0xff]  ;;  %v340_v39 = vld [vmem:[#allocation8 + $0x58] sm:$0xff] }
  0x86   :  { %v190_v10 = vmul.f32 %v152_v5, %v81_v63  ;;  %v2391_v47 = vpack.c.bf16 %v382_v42, %v379_v41  ;;  %v111_v56 = vrot.slane %v2878_v30, %v110_v50  ;;  %v220_v62 = vrot.slane %v2883_v32, %v110_v50  ;;  %v391_v42 = vld [vmem:[#allocation8 + $0x1f0] sm:$0xff] }
  0x87   :  { %2074 = vmatpush1.bf16.msra.mxu1 %v2073_v15  ;;  %v261_v11 = vcombine.low %v253_v0, %v260_v6  ;;  %v413_v15 = vld [vmem:[#allocation8 + $0x2a0] sm:$0xff]  ;;  %v115_v57 = vrot.slane %v2878_v30, %v114_v51  ;;  %v224_v63 = vrot.slane %v2883_v32, %v114_v51  ;;  %v228_v0 = vrot.slane %v2883_v32, %v118_v52  ;;  %v343_v51 = vld [vmem:[#allocation8 + $0x70] sm:$0xff] }
  0x88   :  { %2138 = vmatpush1.bf16.msra.mxu0 %v2137_v22  ;;  %2076 = vmatprep.subr.bf16.mxu1 %v2075_v23  ;;  %v512_v22 = vld [vmem:[#allocation8 + $0x5b8] sm:$0xff] }
  0x89   :  { %2140 = vmatprep.subr.bf16.mxu0 %v2139_v24  ;;  %v420_v23 = vld [vmem:[#allocation8 + $0x2d8] sm:$0xff]  ;;  %v423_v24 = vld [vmem:[#allocation8 + $0x2f0] sm:$0xff]  ;;  %v2905_v25 = vadd.f32 %v261_v11, %v190_v10  ;;  %v2153_v33 = vpack.c.bf16 %v512_v22, %v509_v17  ;;  %v263_v4 = vcombine.low %v224_v63, %v228_v0  ;;  %v334_v17 = vld [vmem:[#allocation8 + $0x28] sm:$0xff] }
  0x8a   :  { %v2091_v34 = vpack.c.bf16 %v423_v24, %v420_v23  ;;  %v82_v10 = vld [vmem:[#allocation2 + $0x8] sm:$0xff]  ;;  %v385_v24 = vld [vmem:[#allocation8 + $0x1c0] sm:$0xff] }
  0x8b   :  { %2078 = vmatpush1.bf16.msra.mxu1 %v2077_v26  ;;  %v516_v26 = vld [vmem:[#allocation8 + $0x5d8] sm:$0xff]  ;;  %v302_v29 = vmin.f32 %v2905_v25, 20.0  ;;  %v277_v7 = vrot.slane %v263_v4, %v2881_v31  ;;  %v349_v0 = vld [vmem:[#allocation8 + $0xa0] sm:$0xff] }
  0x8c   :  { %2142 = vmatpush1.bf16.msra.mxu0 %v2141_v27  ;;  %2080 = vmatprep.subr.bf16.mxu1 %v2079_v28  ;;  %v519_v27 = vld [vmem:[#allocation8 + $0x5f0] sm:$0xff]  ;;  %v2089_v28 = vpack.c.bf16 %v416_v16, %v413_v15 }
  0x8d   :  { %2144 = vmatprep.subr.bf16.mxu0 %v2143_v43  ;;  %v2155_v38 = vpack.c.bf16 %v519_v27, %v516_v26  ;;  %v305_v40 = vmul.f32 1.442695, %v302_v29  ;;  %v522_v43 = vld [vmem:[#allocation8 + $0x608] sm:$0xff]  ;;  %v331_v16 = vld [vmem:[#allocation8 + $0x10] sm:$0xff]  ;;  %v388_v26 = vld [vmem:[#allocation8 + $0x1d8] sm:$0xff] }
  0x8e   :  { %v2159_v48 = vpack.c.bf16 %v525_v44, %v522_v43  ;;  %v521_v27 = vld [vmem:[#allocation8 + $0x600] sm:$0xff]  ;;  %v2395_v37 = vpack.c.bf16 %v388_v26, %v385_v24  ;;  %v394_v43 = vld [vmem:[#allocation8 + $0x208] sm:$0xff]  ;;  %v2163_v44 = vpack.c.bf16 %v531_v36, %v528_v35  ;;  %v548_v26 = vld [vmem:[#allocation8 + $0x6d8] sm:$0xff] }
  0x8f   :  { %2082 = vmatpush1.bf16.msra.mxu1 %v2081_v53  ;;  %2604 = vpow2.f32 %v305_v40  ;;  %v2399_v50 = vpack.c.bf16 %v394_v43, %v391_v42  ;;  %v545_v24 = vld [vmem:[#allocation8 + $0x6c0] sm:$0xff]  ;;  %v364_v36 = vld [vmem:[#allocation8 + $0x118] sm:$0xff]  ;;  %v551_v42 = vld [vmem:[#allocation8 + $0x6f0] sm:$0xff] }
  0x90   :  { %2146 = vmatpush1.bf16.msra.mxu0 %v2145_v58  ;;  %2084 = vmatprep.subr.bf16.mxu1 %v2083_v60  ;;  %v119_v58 = vrot.slane %v2878_v30, %v118_v52  ;;  %v216_v60 = vrot.slane %v2883_v32, %v106_v49  ;;  %v537_v49 = vld [vmem:[#allocation8 + $0x680] sm:$0xff]  ;;  %v346_v52 = vld [vmem:[#allocation8 + $0x88] sm:$0xff] }
  0x91   :  { %2148 = vmatprep.subr.bf16.mxu0 %v2147_v1  ;;  %v153_v1 = vcombine.low %v107_v54, %v111_v56  ;;  %v397_v54 = vld [vmem:[#allocation8 + $0x220] sm:$0xff]  ;;  %v554_v43 = vld [vmem:[#allocation8 + $0x708] sm:$0xff] }
  0x92   :  { %v154_v2 = vcombine.low %v115_v57, %v119_v58  ;;  %v262_v3 = vcombine.low %v216_v60, %v220_v62  ;;  %v533_v57 = vld [vmem:[#allocation8 + $0x660] sm:$0xff]  ;;  %v536_v58 = vld [vmem:[#allocation8 + $0x678] sm:$0xff]  ;;  %v2401_v60 = vpack.c.bf16 %v346_v52, %v343_v51  ;;  %v543_v62 = vld [vmem:[#allocation8 + $0x6b0] sm:$0xff] }
  0x93   :  { %2086 = vmatpush1.bf16.msra.mxu1 %v2085_v9  ;;  %v161_v5 = vrot.slane %v153_v1, %v2881_v31  ;;  %v2169_v1 = vpack.c.bf16 %v536_v58, %v533_v57  ;;  %v361_v35 = vld [vmem:[#allocation8 + $0x100] sm:$0xff]  ;;  %v424_v52 = vld [vmem:[#allocation8 + $0x2f8] sm:$0xff]  ;;  %v567_v58 = vld [vmem:[#allocation8 + $0x770] sm:$0xff] }
  0x94   :  { %2150 = vmatpush1.bf16.msra.mxu0 %v2149_v12  ;;  %2088 = vmatprep.subr.bf16.mxu1 %v2087_v14  ;;  %v168_v6 = vrot.slane %v154_v2, %v2881_v31  ;;  %v270_v30 = vrot.slane %v262_v3, %v2881_v31  ;;  %v403_v2 = vld [vmem:[#allocation8 + $0x250] sm:$0xff]  ;;  %v406_v3 = vld [vmem:[#allocation8 + $0x268] sm:$0xff]  ;;  %v421_v51 = vld [vmem:[#allocation8 + $0x2e0] sm:$0xff] }
  0x95   :  { %2152 = vmatprep.subr.bf16.mxu0 %v2151_v18  ;;  %v564_v57 = vld [vmem:[#allocation8 + $0x758] sm:$0xff] }
  0x96   :  { %v169_v8 = vcombine.low %v161_v5, %v168_v6  ;;  %v278_v9 = vcombine.low %v270_v30, %v277_v7  ;;  %v539_v6 = vld [vmem:[#allocation8 + $0x690] sm:$0xff]  ;;  %v542_v30 = vld [vmem:[#allocation8 + $0x6a8] sm:$0xff] }
  0x97   :  { %2090 = vmatpush1.bf16.msra.mxu1 %v2089_v28  ;;  %v524_v28 = vld [vmem:[#allocation8 + $0x618] sm:$0xff] }
  0x98   :  { %2154 = vmatpush1.bf16.msra.mxu0 %v2153_v33  ;;  %2092 = vmatprep.subr.bf16.mxu1 %v2091_v34  ;;  %v191_v12 = vmul.f32 %v169_v8, %v82_v10  ;;  %v2161_v41 = vpack.c.bf16 %v524_v28, %v521_v27  ;;  %v546_v8 = vld [vmem:[#allocation8 + $0x6c8] sm:$0xff]  ;;  %v552_v28 = vld [vmem:[#allocation8 + $0x6f8] sm:$0xff] }
  0x99   :  { %2156 = vmatprep.subr.bf16.mxu0 %v2155_v38  ;;  %v2605_v53 = vpop.eup %2604  ;;  %v337_v38 = vld [vmem:[#allocation8 + $0x40] sm:$0xff] }
  0x9a   :  { %v311_v55 = vadd.f32 2.0, %v2605_v53  ;;  %v2924_v14 = vadd.f32 %v278_v9, %v191_v12  ;;  %v549_v9 = vld [vmem:[#allocation8 + $0x6e0] sm:$0xff]  ;;  %v355_v12 = vld [vmem:[#allocation8 + $0xd0] sm:$0xff] }
  0x9b   :  { %2094 = vmatpush1.bf16.msra.mxu1 %v2093_v45  ;;  %v527_v45 = vld [vmem:[#allocation8 + $0x630] sm:$0xff] }
  0x9c   :  { %2158 = vmatpush1.bf16.msra.mxu0 %v2157_v46  ;;  %2392 = vmatprep.subr.bf16.mxu1 %v2391_v47  ;;  %v314_v61 = vmul.f32 %v2605_v53, %v311_v55  ;;  %v303_v18 = vmin.f32 %v2924_v14, 20.0  ;;  %v530_v46 = vld [vmem:[#allocation8 + $0x648] sm:$0xff]  ;;  %v2397_v47 = vpack.c.bf16 %v340_v39, %v337_v38  ;;  %v400_v55 = vld [vmem:[#allocation8 + $0x238] sm:$0xff]  ;;  %v415_v38 = vld [vmem:[#allocation8 + $0x2b0] sm:$0xff] }
  0x9d   :  { %2160 = vmatprep.subr.bf16.mxu0 %v2159_v48  ;;  %v534_v48 = vld [vmem:[#allocation8 + $0x668] sm:$0xff]  ;;  %v2165_v53 = vpack.c.bf16 %v530_v46, %v527_v45  ;;  %v2403_v63 = vpack.c.bf16 %v400_v55, %v397_v54  ;;  %v561_v46 = vld [vmem:[#allocation8 + $0x740] sm:$0xff]  ;;  %v560_v55 = vld [vmem:[#allocation8 + $0x738] sm:$0xff] }
  0x9e   :  { %v317_v59 = vadd.f32 2.0, %v314_v61  ;;  %v307_v29 = vmul.f32 1.442695, %v303_v18  ;;  %v2167_v56 = vpack.c.bf16 %v537_v49, %v534_v48  ;;  %v418_v39 = vld [vmem:[#allocation8 + $0x2c8] sm:$0xff]  ;;  %v367_v48 = vld [vmem:[#allocation8 + $0x130] sm:$0xff]  ;;  %v557_v54 = vld [vmem:[#allocation8 + $0x720] sm:$0xff] }
  0x9f   :  { %v558_v45 = vld [vmem:[#allocation8 + $0x728] sm:$0xff] }
  0xa0   :  { %2606 = vrcp.f32 %v317_v59  ;;  %v352_v59 = vld [vmem:[#allocation8 + $0xb8] sm:$0xff]  ;;  %v370_v49 = vld [vmem:[#allocation8 + $0x148] sm:$0xff] }
  0xa1   :  { %2608 = vpow2.f32 %v307_v29  ;;  %v2405_v7 = vpack.c.bf16 %v352_v59, %v349_v0  ;;  %v555_v29 = vld [vmem:[#allocation8 + $0x710] sm:$0xff]  ;;  %v478_v59 = vld [vmem:[#allocation8 + $0x4a8] sm:$0xff] }
  0xa2   :  { %v475_v0 = vld [vmem:[#allocation8 + $0x490] sm:$0xff] }
  0xaa   :  { %v2607_v11 = vpop.eup %2606 }
  0xab   :  { %v321_v32 = vmul.f32 %v2607_v11, %v314_v61  ;;  %v540_v61 = vld [vmem:[#allocation8 + $0x698] sm:$0xff]  ;;  %v2609_v4 = vpop.eup %2608  ;;  %v2407_v11 = vpack.c.bf16 %v406_v3, %v403_v2  ;;  %v563_v2 = vld [vmem:[#allocation8 + $0x750] sm:$0xff]  ;;  %v566_v3 = vld [vmem:[#allocation8 + $0x768] sm:$0xff] }
  0xac   :  { %v2171_v5 = vpack.c.bf16 %v543_v62, %v540_v61  ;;  %v312_v10 = vadd.f32 2.0, %v2609_v4  ;;  %v373_v61 = vld [vmem:[#allocation8 + $0x160] sm:$0xff]  ;;  %v376_v62 = vld [vmem:[#allocation8 + $0x178] sm:$0xff] }
  0xad   :  { %v326_v15 = vmul.f32 %v321_v32, %v2905_v25  ;;  %v2393_v25 = vpack.c.bf16 %v334_v17, %v331_v16  ;;  %v358_v32 = vld [vmem:[#allocation8 + $0xe8] sm:$0xff]  ;;  %v409_v16 = vld [vmem:[#allocation8 + $0x280] sm:$0xff]  ;;  %v412_v17 = vld [vmem:[#allocation8 + $0x298] sm:$0xff] }
  0xae   :  { %v2943_v18 = vmul.f32 %v2609_v4, %v312_v10  ;;  %v2409_v27 = vpack.c.bf16 %v358_v32, %v355_v12  ;;  %v481_v12 = vld [vmem:[#allocation8 + $0x4c0] sm:$0xff]  ;;  %v484_v32 = vld [vmem:[#allocation8 + $0x4d8] sm:$0xff] }
  0xaf   :  { %v2929_v22 = vrot.slane %v326_v15, %v2881_v31  ;;  %v892_v23 = vcombine.high %v326_v15, %v326_v15  ;;  %v2173_v15 = vpack.c.bf16 %v542_v30, %v539_v6  ;;  %v570_v6 = vld [vmem:[#allocation8 + $0x788] sm:$0xff]  ;;  %v573_v30 = vld [vmem:[#allocation8 + $0x7a0] sm:$0xff] }
  0xb1   :  { %v907_v33 = vcombine.high %v2929_v22, %v2929_v22  ;;  %v2934_v34 = vrot.slane %v892_v23, %v2881_v31  ;;  %v2175_v23 = vpack.c.bf16 %v549_v9, %v546_v8  ;;  %v427_v8 = vld [vmem:[#allocation8 + $0x310] sm:$0xff]  ;;  %v430_v9 = vld [vmem:[#allocation8 + $0x328] sm:$0xff] }
  0xb3   :  { %1031 = vmatprep.mubr.f32.mxu1 %v907_v33  ;;  %v2938_v40 = vcombine.high %v2934_v34, %v2934_v34 }
  0xb4   :  { %1032 = vmatmul.mubr.f32.vlgmr.msra.gmra.mrb[0].mxu1 %v2929_v22 }
  0xb5   :  { %1102 = vmatprep.mubr.f32.mxu0 %v2938_v40  ;;  %2394 = vmatpush3.bf16.msra.mxu1 %v2393_v25  ;;  %v2411_v25 = vpack.c.bf16 %v412_v17, %v409_v16  ;;  %v569_v16 = vld [vmem:[#allocation8 + $0x780] sm:$0xff]  ;;  %v572_v17 = vld [vmem:[#allocation8 + $0x798] sm:$0xff] }
  0xb6   :  { %1103 = vmatmul.mubr.f32.vlgmr.msra.gmra.mrb[0].mxu0 %v2934_v34  ;;  %2396 = vmatprep.subr.bf16.mxu1 %v2395_v37  ;;  %v2177_v37 = vpack.c.bf16 %v548_v26, %v545_v24  ;;  %v2425_v24 = vpack.c.bf16 %v430_v9, %v427_v8  ;;  %v576_v26 = vld [vmem:[#allocation8 + $0x7b8] sm:$0xff]  ;;  %v593_v8 = vld [vmem:[#allocation8 + $0x840] sm:$0xff] }
  0xb7   :  { %2162 = vmatpush1.bf16.msra.mxu0 %v2161_v41  ;;  %1457 = vmatprep.mubr.f32.mxu1 %v907_v33  ;;  %v318_v33 = vadd.f32 2.0, %v2943_v18  ;;  %v2179_v41 = vpack.c.bf16 %v555_v29, %v552_v28  ;;  %v2427_v28 = vpack.c.bf16 %v484_v32, %v481_v12  ;;  %v433_v29 = vld [vmem:[#allocation8 + $0x340] sm:$0xff]  ;;  %v596_v9 = vld [vmem:[#allocation8 + $0x858] sm:$0xff]  ;;  %v603_v12 = vld [vmem:[#allocation8 + $0x890] sm:$0xff] }
  0xb8   :  { %2164 = vmatprep.subr.bf16.mxu0 %v2163_v44  ;;  %v2413_v44 = vpack.c.bf16 %v364_v36, %v361_v35  ;;  %v487_v35 = vld [vmem:[#allocation8 + $0x4f0] sm:$0xff]  ;;  %v490_v36 = vld [vmem:[#allocation8 + $0x508] sm:$0xff] }
  0xb9   :  { %2398 = vmatpush3.bf16.msra.mxu1 %v2397_v47  ;;  %2610 = vrcp.f32 %v318_v33  ;;  %v2415_v47 = vpack.c.bf16 %v418_v39, %v415_v38  ;;  %v436_v33 = vld [vmem:[#allocation8 + $0x358] sm:$0xff]  ;;  %v578_v38 = vld [vmem:[#allocation8 + $0x7c8] sm:$0xff] }
  0xba   :  { %2400 = vmatprep.subr.bf16.mxu1 %v2399_v50  ;;  %v2181_v50 = vpack.c.bf16 %v554_v43, %v551_v42  ;;  %v582_v42 = vld [vmem:[#allocation8 + $0x7e8] sm:$0xff]  ;;  %v585_v43 = vld [vmem:[#allocation8 + $0x800] sm:$0xff] }
  0xbb   :  { %2166 = vmatpush1.bf16.msra.mxu0 %v2165_v53  ;;  %v2183_v53 = vpack.c.bf16 %v561_v46, %v558_v45  ;;  %v439_v45 = vld [vmem:[#allocation8 + $0x370] sm:$0xff]  ;;  %v442_v46 = vld [vmem:[#allocation8 + $0x388] sm:$0xff] }
  0xbc   :  { %2168 = vmatprep.subr.bf16.mxu0 %v2167_v56  ;;  %v2417_v56 = vpack.c.bf16 %v370_v49, %v367_v48  ;;  %v496_v48 = vld [vmem:[#allocation8 + $0x538] sm:$0xff]  ;;  %v2199_v49 = vpack.c.bf16 %v585_v43, %v582_v42 }
  0xbd   :  { %2402 = vmatpush3.bf16.msra.mxu1 %v2401_v60  ;;  %v2419_v60 = vpack.c.bf16 %v424_v52, %v421_v51  ;;  %v584_v51 = vld [vmem:[#allocation8 + $0x7f8] sm:$0xff]  ;;  %v2433_v52 = vpack.c.bf16 %v442_v46, %v439_v45  ;;  %v517_v45 = vld [vmem:[#allocation8 + $0x5e0] sm:$0xff] }
  0xbe   :  { %2404 = vmatprep.subr.bf16.mxu1 %v2403_v63  ;;  %v2185_v63 = vpack.c.bf16 %v560_v55, %v557_v54  ;;  %v591_v54 = vld [vmem:[#allocation8 + $0x830] sm:$0xff]  ;;  %v445_v55 = vld [vmem:[#allocation8 + $0x3a0] sm:$0xff]  ;;  %v612_v42 = vld [vmem:[#allocation8 + $0x8d8] sm:$0xff] }
  0xbf   :  { %2170 = vmatpush1.bf16.msra.mxu0 %v2169_v1  ;;  %v2187_v1 = vpack.c.bf16 %v567_v58, %v564_v57  ;;  %v499_v58 = vld [vmem:[#allocation8 + $0x550] sm:$0xff]  ;;  %v520_v46 = vld [vmem:[#allocation8 + $0x5f8] sm:$0xff] }
  0xc0   :  { %2172 = vmatprep.subr.bf16.mxu0 %v2171_v5  ;;  %v2421_v5 = vpack.c.bf16 %v376_v62, %v373_v61  ;;  %v587_v62 = vld [vmem:[#allocation8 + $0x810] sm:$0xff] }
  0xc1   :  { %2406 = vmatpush3.bf16.msra.mxu1 %v2405_v7  ;;  %v2423_v7 = vpack.c.bf16 %v478_v59, %v475_v0  ;;  %v594_v59 = vld [vmem:[#allocation8 + $0x848] sm:$0xff] }
  0xc2   :  { %2408 = vmatprep.subr.bf16.mxu1 %v2407_v11  ;;  %v2189_v11 = vpack.c.bf16 %v566_v3, %v563_v2  ;;  %v451_v3 = vld [vmem:[#allocation8 + $0x3d0] sm:$0xff] }
  0xc3   :  { %2174 = vmatpush1.bf16.msra.mxu0 %v2173_v15  ;;  %v2611_v4 = vpop.eup %2610  ;;  %v2191_v15 = vpack.c.bf16 %v573_v30, %v570_v6  ;;  %v505_v6 = vld [vmem:[#allocation8 + $0x580] sm:$0xff]  ;;  %v508_v30 = vld [vmem:[#allocation8 + $0x598] sm:$0xff] }
  0xc4   :  { %2176 = vmatprep.subr.bf16.mxu0 %v2175_v23  ;;  %v323_v10 = vmul.f32 %v2611_v4, %v2943_v18  ;;  %v454_v4 = vld [vmem:[#allocation8 + $0x3e8] sm:$0xff]  ;;  %v2443_v32 = vpack.c.bf16 %v508_v30, %v505_v6 }
  0xc5   :  { %2410 = vmatpush3.bf16.msra.mxu1 %v2409_v27  ;;  %v579_v27 = vld [vmem:[#allocation8 + $0x7d0] sm:$0xff] }
  0xc6   :  { %2412 = vmatprep.subr.bf16.mxu1 %v2411_v25  ;;  %v2948_v23 = vmul.f32 %v323_v10, %v2924_v14  ;;  %v2193_v25 = vpack.c.bf16 %v572_v17, %v569_v16  ;;  %v2195_v14 = vpack.c.bf16 %v579_v27, %v576_v26  ;;  %v2441_v10 = vpack.c.bf16 %v454_v4, %v451_v3  ;;  %v460_v16 = vld [vmem:[#allocation8 + $0x418] sm:$0xff]  ;;  %v514_v26 = vld [vmem:[#allocation8 + $0x5c8] sm:$0xff]  ;;  %v621_v4 = vld [vmem:[#allocation8 + $0x920] sm:$0xff] }
  0xc7   :  { %2178 = vmatpush1.bf16.msra.mxu0 %v2177_v37  ;;  %v575_v37 = vld [vmem:[#allocation8 + $0x7b0] sm:$0xff]  ;;  %v2209_v17 = vpack.c.bf16 %v596_v9, %v593_v8  ;;  %v618_v3 = vld [vmem:[#allocation8 + $0x908] sm:$0xff] }
  0xc8   :  { %2180 = vmatprep.subr.bf16.mxu0 %v2179_v41  ;;  %v2952_v18 = vrot.slane %v2948_v23, %v2881_v31  ;;  %v2429_v41 = vpack.c.bf16 %v436_v33, %v433_v29  ;;  %v602_v29 = vld [vmem:[#allocation8 + $0x888] sm:$0xff] }
  0xc9   :  { %2414 = vmatpush3.bf16.msra.mxu1 %v2413_v44  ;;  %v2431_v44 = vpack.c.bf16 %v490_v36, %v487_v35  ;;  %v606_v33 = vld [vmem:[#allocation8 + $0x8a8] sm:$0xff]  ;;  %v609_v35 = vld [vmem:[#allocation8 + $0x8c0] sm:$0xff] }
  0xca   :  { %2416 = vmatprep.subr.bf16.mxu1 %v2415_v47  ;;  %v2957_v39 = vcombine.high %v2952_v18, %v2952_v18  ;;  %v493_v47 = vld [vmem:[#allocation8 + $0x520] sm:$0xff]  ;;  %v526_v8 = vld [vmem:[#allocation8 + $0x628] sm:$0xff] }
  0xcb   :  { %2182 = vmatpush1.bf16.msra.mxu0 %v2181_v50  ;;  %v581_v50 = vld [vmem:[#allocation8 + $0x7e0] sm:$0xff] }
  0xcc   :  { %2184 = vmatprep.subr.bf16.mxu0 %v2183_v53  ;;  %1173 = vmatprep.mubr.f32.mxu0 %v2957_v39  ;;  %v588_v53 = vld [vmem:[#allocation8 + $0x818] sm:$0xff]  ;;  %v2201_v57 = vpack.c.bf16 %v584_v51, %v581_v50  ;;  %v605_v36 = vld [vmem:[#allocation8 + $0x8a0] sm:$0xff]  ;;  %v2451_v51 = vpack.c.bf16 %v520_v46, %v517_v45 }
  0xcd   :  { %2418 = vmatpush3.bf16.msra.mxu1 %v2417_v56  ;;  %v448_v56 = vld [vmem:[#allocation8 + $0x3b8] sm:$0xff]  ;;  %v2203_v61 = vpack.c.bf16 %v591_v54, %v588_v53  ;;  %v909_v53 = vcombine.high %v2948_v23, %v2948_v23  ;;  %v85_v54 = vld [vmem:[#allocation5 + $0x8] sm:$0xf] }
  0xce   :  { %2420 = vmatprep.subr.bf16.mxu1 %v2419_v60  ;;  %v502_v60 = vld [vmem:[#allocation8 + $0x568] sm:$0xff]  ;;  %v2437_v0 = vpack.c.bf16 %v448_v56, %v445_v55  ;;  %v571_v55 = vld [vmem:[#allocation8 + $0x790] sm:$0xff] }
  0xcf   :  { %2186 = vmatpush1.bf16.msra.mxu0 %v2185_v63  ;;  %v590_v63 = vld [vmem:[#allocation8 + $0x828] sm:$0xff]  ;;  %v2439_v2 = vpack.c.bf16 %v502_v60, %v499_v58  ;;  %v127_v58 = vrot.slane %v85_v54, %v2870_v19  ;;  %v131_v60 = vrot.slane %v85_v54, %v2873_v20 }
  0xd0   :  { %2188 = vmatprep.subr.bf16.mxu0 %v2187_v1  ;;  %v597_v1 = vld [vmem:[#allocation8 + $0x860] sm:$0xff]  ;;  %v574_v56 = vld [vmem:[#allocation8 + $0x7a8] sm:$0xff] }
  0xd1   :  { %2422 = vmatpush3.bf16.msra.mxu1 %v2421_v5  ;;  %v2205_v5 = vpack.c.bf16 %v590_v63, %v587_v62  ;;  %v611_v62 = vld [vmem:[#allocation8 + $0x8d0] sm:$0xff]  ;;  %v614_v63 = vld [vmem:[#allocation8 + $0x8e8] sm:$0xff]  ;;  %v2455_v30 = vpack.c.bf16 %v574_v56, %v571_v55  ;;  %v592_v56 = vld [vmem:[#allocation8 + $0x838] sm:$0xff] }
  0xd2   :  { %2424 = vmatprep.subr.bf16.mxu1 %v2423_v7  ;;  %v2207_v7 = vpack.c.bf16 %v597_v1, %v594_v59 }
  0xd3   :  { %2190 = vmatpush1.bf16.msra.mxu0 %v2189_v11  ;;  %v600_v11 = vld [vmem:[#allocation8 + $0x878] sm:$0xff] }
  0xd4   :  { %2192 = vmatprep.subr.bf16.mxu0 %v2191_v15  ;;  %1458 = vmatmul.mubr.f32.vlgmr.msra.gmra.mrb[2].mxu1 %v2929_v22  ;;  %v2197_v22 = vpack.c.bf16 %v578_v38, %v575_v37  ;;  %v457_v15 = vld [vmem:[#allocation8 + $0x400] sm:$0xff]  ;;  %v2211_v27 = vpack.c.bf16 %v603_v12, %v600_v11  ;;  %v463_v38 = vld [vmem:[#allocation8 + $0x430] sm:$0xff]  ;;  %v2221_v11 = vpack.c.bf16 %v614_v63, %v611_v62  ;;  %v636_v62 = vld [vmem:[#allocation8 + $0x998] sm:$0xff] }
  0xd5   :  { %2426 = vmatpush3.bf16.msra.mxu1 %v2425_v24  ;;  %1527 = vmatprep.mubr.f32.mxu1 %v2938_v40  ;;  %v2435_v40 = vpack.c.bf16 %v496_v48, %v493_v47  ;;  %v511_v24 = vld [vmem:[#allocation8 + $0x5b0] sm:$0xff]  ;;  %v469_v48 = vld [vmem:[#allocation8 + $0x460] sm:$0xff] }
  0xd6   :  { %2428 = vmatprep.subr.bf16.mxu1 %v2427_v28  ;;  %v599_v28 = vld [vmem:[#allocation8 + $0x870] sm:$0xff]  ;;  %v2447_v37 = vpack.c.bf16 %v514_v26, %v511_v24  ;;  %v577_v12 = vld [vmem:[#allocation8 + $0x7c0] sm:$0xff]  ;;  %v620_v26 = vld [vmem:[#allocation8 + $0x918] sm:$0xff] }
  0xd7   :  { %2194 = vmatpush1.bf16.msra.mxu0 %v2193_v25  ;;  %v2445_v25 = vpack.c.bf16 %v460_v16, %v457_v15  ;;  %v2213_v43 = vpack.c.bf16 %v602_v29, %v599_v28  ;;  %v2972_v15 = vrot.slane %v909_v53, %v2881_v31  ;;  %v617_v24 = vld [vmem:[#allocation8 + $0x900] sm:$0xff]  ;;  %v639_v63 = vld [vmem:[#allocation8 + $0x9b0] sm:$0xff] }
  0xd8   :  { %2196 = vmatprep.subr.bf16.mxu0 %v2195_v14  ;;  %v608_v14 = vld [vmem:[#allocation8 + $0x8b8] sm:$0xff] }
  0xd9   :  { %2430 = vmatpush3.bf16.msra.mxu1 %v2429_v41  ;;  %v466_v41 = vld [vmem:[#allocation8 + $0x448] sm:$0xff]  ;;  %v2980_v45 = vcombine.high %v2972_v15, %v2972_v15 }
  0xda   :  { %2432 = vmatprep.subr.bf16.mxu1 %v2431_v44  ;;  %v615_v44 = vld [vmem:[#allocation8 + $0x8f0] sm:$0xff]  ;;  %v2449_v47 = vpack.c.bf16 %v466_v41, %v463_v38  ;;  %v532_v38 = vld [vmem:[#allocation8 + $0x658] sm:$0xff] }
  0xdb   :  { %2198 = vmatpush1.bf16.msra.mxu0 %v2197_v22  ;;  %v2215_v22 = vpack.c.bf16 %v609_v35, %v606_v33  ;;  %v2219_v50 = vpack.c.bf16 %v615_v44, %v612_v42  ;;  %v627_v35 = vld [vmem:[#allocation8 + $0x950] sm:$0xff]  ;;  %v2225_v42 = vpack.c.bf16 %v620_v26, %v617_v24  ;;  %v586_v44 = vld [vmem:[#allocation8 + $0x808] sm:$0xff]  ;;  %v641_v24 = vld [vmem:[#allocation8 + $0x9c0] sm:$0xff] }
  0xdc   :  { %2200 = vmatprep.subr.bf16.mxu0 %v2199_v49  ;;  %v2217_v49 = vpack.c.bf16 %v608_v14, %v605_v36  ;;  %v644_v26 = vld [vmem:[#allocation8 + $0x9d8] sm:$0xff] }
  0xdd   :  { %2434 = vmatpush3.bf16.msra.mxu1 %v2433_v52  ;;  %v472_v52 = vld [vmem:[#allocation8 + $0x478] sm:$0xff] }
  0xde   :  { %2436 = vmatprep.subr.bf16.mxu1 %v2435_v40  ;;  %v194_v40 = vld [vmem:[#allocation7 + $0x8] sm:$0xf] }
  0xdf   :  { %2202 = vmatpush1.bf16.msra.mxu0 %v2201_v57  ;;  %v123_v57 = vrot.slane %v85_v54, %v2867_v13  ;;  %v236_v23 = vrot.slane %v194_v40, %v2870_v19  ;;  %v240_v59 = vrot.slane %v194_v40, %v2873_v20  ;;  %v244_v1 = vrot.slane %v194_v40, %v2876_v21 }
  0xe0   :  { %2204 = vmatprep.subr.bf16.mxu0 %v2203_v61  ;;  %v135_v61 = vrot.slane %v85_v54, %v2876_v21  ;;  %v535_v54 = vld [vmem:[#allocation8 + $0x670] sm:$0xff] }
  0xe1   :  { %2438 = vmatpush3.bf16.msra.mxu1 %v2437_v0  ;;  %v232_v0 = vrot.slane %v194_v40, %v2867_v13  ;;  %v538_v40 = vld [vmem:[#allocation8 + $0x688] sm:$0xff] }
  0xe2   :  { %2440 = vmatprep.subr.bf16.mxu1 %v2439_v2  ;;  %v2453_v2 = vpack.c.bf16 %v472_v52, %v469_v48  ;;  %v171_v6 = vcombine.low %v131_v60, %v135_v61  ;;  %v626_v48 = vld [vmem:[#allocation8 + $0x948] sm:$0xff]  ;;  %v629_v60 = vld [vmem:[#allocation8 + $0x960] sm:$0xff]  ;;  %v2465_v61 = vpack.c.bf16 %v538_v40, %v535_v54  ;;  %v656_v40 = vld [vmem:[#allocation8 + $0xa38] sm:$0xff] }
  0xe3   :  { %2206 = vmatpush1.bf16.msra.mxu0 %v2205_v5  ;;  %v170_v5 = vcombine.low %v123_v57, %v127_v58  ;;  %v279_v9 = vcombine.low %v232_v0, %v236_v23  ;;  %v541_v23 = vld [vmem:[#allocation8 + $0x6a0] sm:$0xff] }
  0xe4   :  { %2208 = vmatprep.subr.bf16.mxu0 %v2207_v7  ;;  %v523_v7 = vld [vmem:[#allocation8 + $0x610] sm:$0xff]  ;;  %v185_v16 = vrot.slane %v171_v6, %v2881_v31  ;;  %v653_v54 = vld [vmem:[#allocation8 + $0xa20] sm:$0xff] }
  0xe5   :  { %2442 = vmatpush3.bf16.msra.mxu1 %v2441_v10  ;;  %v280_v10 = vcombine.low %v240_v59, %v244_v1  ;;  %v178_v21 = vrot.slane %v170_v5, %v2881_v31  ;;  %v287_v28 = vrot.slane %v279_v9, %v2881_v31  ;;  %v2457_v33 = vpack.c.bf16 %v526_v8, %v523_v7  ;;  %v544_v59 = vld [vmem:[#allocation8 + $0x6b8] sm:$0xff]  ;;  %v635_v6 = vld [vmem:[#allocation8 + $0x990] sm:$0xff]  ;;  %v642_v8 = vld [vmem:[#allocation8 + $0x9c8] sm:$0xff] }
  0xe6   :  { %2444 = vmatprep.subr.bf16.mxu1 %v2443_v32  ;;  %v580_v32 = vld [vmem:[#allocation8 + $0x7d8] sm:$0xff]  ;;  %v2235_v5 = vpack.c.bf16 %v639_v63, %v636_v62  ;;  %v2469_v7 = vpack.c.bf16 %v544_v59, %v541_v23  ;;  %v645_v9 = vld [vmem:[#allocation8 + $0x9e0] sm:$0xff]  ;;  %v667_v62 = vld [vmem:[#allocation8 + $0xa90] sm:$0xff] }
  0xe7   :  { %2210 = vmatpush1.bf16.msra.mxu0 %v2209_v17  ;;  %v2223_v17 = vpack.c.bf16 %v621_v4, %v618_v3  ;;  %v294_v29 = vrot.slane %v280_v10, %v2881_v31  ;;  %v186_v36 = vcombine.low %v178_v21, %v185_v16  ;;  %v2459_v14 = vpack.c.bf16 %v580_v32, %v577_v12  ;;  %v598_v3 = vld [vmem:[#allocation8 + $0x868] sm:$0xff]  ;;  %v601_v21 = vld [vmem:[#allocation8 + $0x880] sm:$0xff]  ;;  %v604_v16 = vld [vmem:[#allocation8 + $0x898] sm:$0xff] }
  0xe8   :  { %2212 = vmatprep.subr.bf16.mxu0 %v2211_v27  ;;  %v83_v27 = vld [vmem:[#allocation2 + $0x10] sm:$0xff]  ;;  %v550_v12 = vld [vmem:[#allocation8 + $0x6e8] sm:$0xff]  ;;  %v659_v23 = vld [vmem:[#allocation8 + $0xa50] sm:$0xff] }
  0xe9   :  { %2446 = vmatpush3.bf16.msra.mxu1 %v2445_v25  ;;  %v624_v25 = vld [vmem:[#allocation8 + $0x938] sm:$0xff]  ;;  %v295_v41 = vcombine.low %v287_v28, %v294_v29  ;;  %v192_v46 = vmul.f32 %v186_v36, %v83_v27  ;;  %v651_v29 = vld [vmem:[#allocation8 + $0xa10] sm:$0xff]  ;;  %v2241_v36 = vpack.c.bf16 %v644_v26, %v641_v24  ;;  %v670_v63 = vld [vmem:[#allocation8 + $0xaa8] sm:$0xff] }
  0xea   :  { %2448 = vmatprep.subr.bf16.mxu1 %v2447_v37  ;;  %v529_v37 = vld [vmem:[#allocation8 + $0x640] sm:$0xff]  ;;  %v648_v28 = vld [vmem:[#allocation8 + $0x9f8] sm:$0xff]  ;;  %v662_v59 = vld [vmem:[#allocation8 + $0xa68] sm:$0xff] }
  0xeb   :  { %2214 = vmatpush1.bf16.msra.mxu0 %v2213_v43  ;;  %v583_v43 = vld [vmem:[#allocation8 + $0x7f0] sm:$0xff]  ;;  %v2984_v52 = vadd.f32 %v295_v41, %v192_v46  ;;  %v657_v46 = vld [vmem:[#allocation8 + $0xa40] sm:$0xff] }
  0xec   :  { %2216 = vmatprep.subr.bf16.mxu0 %v2215_v22  ;;  %v2227_v22 = vpack.c.bf16 %v627_v35, %v624_v25  ;;  %v2463_v53 = vpack.c.bf16 %v586_v44, %v583_v43  ;;  %v553_v25 = vld [vmem:[#allocation8 + $0x700] sm:$0xff]  ;;  %v556_v35 = vld [vmem:[#allocation8 + $0x718] sm:$0xff]  ;;  %v647_v41 = vld [vmem:[#allocation8 + $0x9f0] sm:$0xff] }
  0xed   :  { %2450 = vmatpush3.bf16.msra.mxu1 %v2449_v47  ;;  %v623_v47 = vld [vmem:[#allocation8 + $0x930] sm:$0xff]  ;;  %v304_v57 = vmin.f32 %v2984_v52, 20.0  ;;  %v2477_v43 = vpack.c.bf16 %v556_v35, %v553_v25  ;;  %v654_v44 = vld [vmem:[#allocation8 + $0xa28] sm:$0xff]  ;;  %v625_v26 = vld [vmem:[#allocation8 + $0x940] sm:$0xff] }
  0xee   :  { %2452 = vmatprep.subr.bf16.mxu1 %v2451_v51  ;;  %v633_v51 = vld [vmem:[#allocation8 + $0x980] sm:$0xff]  ;;  %v2229_v55 = vpack.c.bf16 %v626_v48, %v623_v47  ;;  %v559_v47 = vld [vmem:[#allocation8 + $0x730] sm:$0xff]  ;;  %v562_v48 = vld [vmem:[#allocation8 + $0x748] sm:$0xff] }
  0xef   :  { %2218 = vmatpush1.bf16.msra.mxu0 %v2217_v49  ;;  %v2461_v49 = vpack.c.bf16 %v532_v38, %v529_v37  ;;  %v309_v4 = vmul.f32 1.442695, %v304_v57  ;;  %v610_v37 = vld [vmem:[#allocation8 + $0x8c8] sm:$0xff]  ;;  %v2243_v38 = vpack.c.bf16 %v651_v29, %v648_v28  ;;  %v663_v57 = vld [vmem:[#allocation8 + $0xa70] sm:$0xff] }
  0xf0   :  { %2220 = vmatprep.subr.bf16.mxu0 %v2219_v50  ;;  %v630_v50 = vld [vmem:[#allocation8 + $0x968] sm:$0xff]  ;;  %v679_v29 = vld [vmem:[#allocation8 + $0xaf0] sm:$0xff] }
  0xf1   :  { %2454 = vmatpush3.bf16.msra.mxu1 %v2453_v2  ;;  %v2231_v58 = vpack.c.bf16 %v633_v51, %v630_v50  ;;  %v595_v2 = vld [vmem:[#allocation8 + $0x850] sm:$0xff]  ;;  %2612 = vpow2.f32 %v309_v4  ;;  %v613_v50 = vld [vmem:[#allocation8 + $0x8e0] sm:$0xff]  ;;  %v616_v51 = vld [vmem:[#allocation8 + $0x8f8] sm:$0xff] }
  0xf2   :  { %2456 = vmatprep.subr.bf16.mxu1 %v2455_v30  ;;  %v638_v30 = vld [vmem:[#allocation8 + $0x9a8] sm:$0xff]  ;;  %v2471_v10 = vpack.c.bf16 %v598_v3, %v595_v2  ;;  %v669_v4 = vld [vmem:[#allocation8 + $0xaa0] sm:$0xff]  ;;  %v671_v35 = vld [vmem:[#allocation8 + $0xab0] sm:$0xff] }
  0xf3   :  { %2222 = vmatpush1.bf16.msra.mxu0 %v2221_v11  ;;  %v547_v11 = vld [vmem:[#allocation8 + $0x6d0] sm:$0xff]  ;;  %v2237_v32 = vpack.c.bf16 %v638_v30, %v635_v6  ;;  %v666_v3 = vld [vmem:[#allocation8 + $0xa88] sm:$0xff] }
  0xf4   :  { %2224 = vmatprep.subr.bf16.mxu0 %v2223_v17  ;;  %1528 = vmatmul.mubr.f32.vlgmr.msra.gmra.mrb[4].mxu1 %v2934_v34  ;;  %v589_v34 = vld [vmem:[#allocation8 + $0x820] sm:$0xff]  ;;  %v2239_v17 = vpack.c.bf16 %v645_v9, %v642_v8  ;;  %v2473_v27 = vpack.c.bf16 %v550_v12, %v547_v11  ;;  %v619_v6 = vld [vmem:[#allocation8 + $0x910] sm:$0xff]  ;;  %v622_v30 = vld [vmem:[#allocation8 + $0x928] sm:$0xff] }
  0xf5   :  { %2458 = vmatpush3.bf16.msra.mxu1 %v2457_v33  ;;  %1597 = vmatprep.mubr.f32.mxu1 %v2957_v39  ;;  %v632_v39 = vld [vmem:[#allocation8 + $0x978] sm:$0xff]  ;;  %v2467_v0 = vpack.c.bf16 %v592_v56, %v589_v34  ;;  %v2475_v33 = vpack.c.bf16 %v604_v16, %v601_v21  ;;  %v2481_v34 = vpack.c.bf16 %v562_v48, %v559_v47  ;;  %v673_v8 = vld [vmem:[#allocation8 + $0xac0] sm:$0xff] }
  0xf6   :  { %1174 = vmatmul.mubr.f32.vlgmr.msra.gmra.mrb[0].mxu0 %v2952_v18  ;;  %2460 = vmatprep.subr.bf16.mxu1 %v2459_v14  ;;  %v2233_v1 = vpack.c.bf16 %v632_v39, %v629_v60  ;;  %v607_v14 = vld [vmem:[#allocation8 + $0x8b0] sm:$0xff]  ;;  %v660_v56 = vld [vmem:[#allocation8 + $0xa58] sm:$0xff]  ;;  %v565_v60 = vld [vmem:[#allocation8 + $0x760] sm:$0xff]  ;;  %v2489_v21 = vpack.c.bf16 %v622_v30, %v619_v6 }
  0xf7   :  { %2226 = vmatpush1.bf16.msra.mxu0 %v2225_v42  ;;  %1244 = vmatprep.mubr.f32.mxu0 %v2980_v45  ;;  %v650_v42 = vld [vmem:[#allocation8 + $0xa08] sm:$0xff]  ;;  %v568_v39 = vld [vmem:[#allocation8 + $0x778] sm:$0xff]  ;;  %v665_v11 = vld [vmem:[#allocation8 + $0xa80] sm:$0xff] }
  0xf8   :  { %2228 = vmatprep.subr.bf16.mxu0 %v2227_v22  ;;  %v2479_v22 = vpack.c.bf16 %v610_v37, %v607_v14  ;;  %v2485_v2 = vpack.c.bf16 %v568_v39, %v565_v60  ;;  %v676_v9 = vld [vmem:[#allocation8 + $0xad8] sm:$0xff]  ;;  %v677_v48 = vld [vmem:[#allocation8 + $0xae0] sm:$0xff]  ;;  %v686_v60 = vld [vmem:[#allocation8 + $0xb28] sm:$0xff] }
  0xf9   :  { %2462 = vmatpush3.bf16.msra.mxu1 %v2461_v49  ;;  %v2245_v49 = vpack.c.bf16 %v650_v42, %v647_v41  ;;  %v668_v12 = vld [vmem:[#allocation8 + $0xa98] sm:$0xff]  ;;  %v2491_v24 = vpack.c.bf16 %v676_v9, %v673_v8  ;;  %v681_v41 = vld [vmem:[#allocation8 + $0xb00] sm:$0xff] }
  0xfa   :  { %2464 = vmatprep.subr.bf16.mxu1 %v2463_v53  ;;  %v2247_v53 = vpack.c.bf16 %v657_v46, %v654_v44  ;;  %v672_v16 = vld [vmem:[#allocation8 + $0xab8] sm:$0xff]  ;;  %v2257_v28 = vpack.c.bf16 %v668_v12, %v665_v11  ;;  %v634_v44 = vld [vmem:[#allocation8 + $0x988] sm:$0xff] }
  0xfb   :  { %2230 = vmatpush1.bf16.msra.mxu0 %v2229_v55  ;;  %v2613_v55 = vpop.eup %2612  ;;  %v688_v47 = vld [vmem:[#allocation8 + $0xb38] sm:$0xff] }
  0xfc   :  { %2232 = vmatprep.subr.bf16.mxu0 %v2231_v58  ;;  %v2483_v58 = vpack.c.bf16 %v616_v51, %v613_v50  ;;  %v684_v51 = vld [vmem:[#allocation8 + $0xb18] sm:$0xff] }
  0xfd   :  { %2466 = vmatpush3.bf16.msra.mxu1 %v2465_v61  ;;  %v2249_v61 = vpack.c.bf16 %v656_v40, %v653_v54  ;;  %v640_v40 = vld [vmem:[#allocation8 + $0x9b8] sm:$0xff] }
  0xfe   :  { %2468 = vmatprep.subr.bf16.mxu1 %v2467_v0  ;;  %v2251_v0 = vpack.c.bf16 %v663_v57, %v660_v56  ;;  %v694_v56 = vld [vmem:[#allocation8 + $0xb68] sm:$0xff]  ;;  %v696_v30 = vld [vmem:[#allocation8 + $0xb78] sm:$0xff] }
  0xff   :  { %2234 = vmatpush1.bf16.msra.mxu0 %v2233_v1  ;;  %v313_v1 = vadd.f32 2.0, %v2613_v55  ;;  %v652_v11 = vld [vmem:[#allocation8 + $0xa18] sm:$0xff] }
 0x100   :  { %2236 = vmatprep.subr.bf16.mxu0 %v2235_v5  ;;  %v2487_v5 = vpack.c.bf16 %v670_v63, %v667_v62  ;;  %v693_v62 = vld [vmem:[#allocation8 + $0xb60] sm:$0xff] }
 0x101   :  { %2470 = vmatpush3.bf16.msra.mxu1 %v2469_v7  ;;  %v2253_v7 = vpack.c.bf16 %v662_v59, %v659_v23  ;;  %v646_v23 = vld [vmem:[#allocation8 + $0x9e8] sm:$0xff] }
 0x102   :  { %2472 = vmatprep.subr.bf16.mxu1 %v2471_v10  ;;  %v2255_v10 = vpack.c.bf16 %v669_v4, %v666_v3  ;;  %v689_v4 = vld [vmem:[#allocation8 + $0xb40] sm:$0xff] }
 0x103   :  { %2238 = vmatpush1.bf16.msra.mxu0 %v2237_v32  ;;  %v2989_v32 = vmul.f32 %v2613_v55, %v313_v1  ;;  %v697_v1 = vld [vmem:[#allocation8 + $0xb80] sm:$0xff] }
 0x104   :  { %2240 = vmatprep.subr.bf16.mxu0 %v2239_v17  ;;  %v675_v17 = vld [vmem:[#allocation8 + $0xad0] sm:$0xff] }
 0x105   :  { %2474 = vmatpush3.bf16.msra.mxu1 %v2473_v27  ;;  %v628_v27 = vld [vmem:[#allocation8 + $0x958] sm:$0xff]  ;;  %v2259_v25 = vpack.c.bf16 %v675_v17, %v672_v16  ;;  %v319_v14 = vadd.f32 2.0, %v2989_v32  ;;  %v706_v16 = vld [vmem:[#allocation8 + $0xbc8] sm:$0xff] }
 0x106   :  { %2476 = vmatprep.subr.bf16.mxu1 %v2475_v33  ;;  %v682_v33 = vld [vmem:[#allocation8 + $0xb08] sm:$0xff]  ;;  %v2493_v37 = vpack.c.bf16 %v628_v27, %v625_v26 }
 0x107   :  { %2242 = vmatpush1.bf16.msra.mxu0 %v2241_v36  ;;  %v674_v36 = vld [vmem:[#allocation8 + $0xac8] sm:$0xff]  ;;  %v2495_v42 = vpack.c.bf16 %v682_v33, %v679_v29  ;;  %2614 = vrcp.f32 %v319_v14  ;;  %v705_v29 = vld [vmem:[#allocation8 + $0xbc0] sm:$0xff] }
 0x108   :  { %2244 = vmatprep.subr.bf16.mxu0 %v2243_v38  ;;  %v678_v38 = vld [vmem:[#allocation8 + $0xae8] sm:$0xff]  ;;  %v2261_v46 = vpack.c.bf16 %v674_v36, %v671_v35  ;;  %v655_v35 = vld [vmem:[#allocation8 + $0xa30] sm:$0xff] }
 0x109   :  { %2478 = vmatpush3.bf16.msra.mxu1 %v2477_v43  ;;  %v631_v43 = vld [vmem:[#allocation8 + $0x970] sm:$0xff]  ;;  %v698_v26 = vld [vmem:[#allocation8 + $0xb88] sm:$0xff] }
 0x10a   :  { %2480 = vmatprep.subr.bf16.mxu1 %v2479_v22  ;;  %v685_v22 = vld [vmem:[#allocation8 + $0xb20] sm:$0xff]  ;;  %v2497_v50 = vpack.c.bf16 %v634_v44, %v631_v43  ;;  %v658_v36 = vld [vmem:[#allocation8 + $0xa48] sm:$0xff]  ;;  %v704_v43 = vld [vmem:[#allocation8 + $0xbb8] sm:$0xff] }
 0x10b   :  { %2246 = vmatpush1.bf16.msra.mxu0 %v2245_v49  ;;  %v680_v49 = vld [vmem:[#allocation8 + $0xaf8] sm:$0xff]  ;;  %v2499_v54 = vpack.c.bf16 %v688_v47, %v685_v22  ;;  %v2513_v44 = vpack.c.bf16 %v658_v36, %v655_v35  ;;  %v711_v22 = vld [vmem:[#allocation8 + $0xbf0] sm:$0xff] }
 0x10c   :  { %2248 = vmatprep.subr.bf16.mxu0 %v2247_v53  ;;  %v687_v53 = vld [vmem:[#allocation8 + $0xb30] sm:$0xff]  ;;  %v2265_v55 = vpack.c.bf16 %v680_v49, %v677_v48  ;;  %v664_v48 = vld [vmem:[#allocation8 + $0xa78] sm:$0xff] }
 0x10d   :  { %2482 = vmatpush3.bf16.msra.mxu1 %v2481_v34  ;;  %v691_v34 = vld [vmem:[#allocation8 + $0xb50] sm:$0xff]  ;;  %v2267_v57 = vpack.c.bf16 %v687_v53, %v684_v51  ;;  %v766_v51 = vld [vmem:[#allocation8 + $0xda8] sm:$0xff]  ;;  %v732_v36 = vld [vmem:[#allocation8 + $0xc98] sm:$0xff] }
 0x10e   :  { %2484 = vmatprep.subr.bf16.mxu1 %v2483_v58  ;;  %v683_v58 = vld [vmem:[#allocation8 + $0xb10] sm:$0xff]  ;;  %v2503_v63 = vpack.c.bf16 %v694_v56, %v691_v34  ;;  %v717_v34 = vld [vmem:[#allocation8 + $0xc20] sm:$0xff] }
 0x10f   :  { %2250 = vmatpush1.bf16.msra.mxu0 %v2249_v61  ;;  %v690_v61 = vld [vmem:[#allocation8 + $0xb48] sm:$0xff]  ;;  %v2269_v59 = vpack.c.bf16 %v686_v60, %v683_v58 }
 0x110   :  { %2252 = vmatprep.subr.bf16.mxu0 %v2251_v0  ;;  %v643_v0 = vld [vmem:[#allocation8 + $0x9d0] sm:$0xff]  ;;  %v2271_v3 = vpack.c.bf16 %v693_v62, %v690_v61  ;;  %v718_v58 = vld [vmem:[#allocation8 + $0xc28] sm:$0xff]  ;;  %v772_v61 = vld [vmem:[#allocation8 + $0xdd8] sm:$0xff] }
 0x111   :  { %2486 = vmatpush3.bf16.msra.mxu1 %v2485_v2  ;;  %v700_v2 = vld [vmem:[#allocation8 + $0xb98] sm:$0xff]  ;;  %v2505_v6 = vpack.c.bf16 %v646_v23, %v643_v0  ;;  %v2615_v8 = vpop.eup %2614 }
 0x112   :  { %2488 = vmatprep.subr.bf16.mxu1 %v2487_v5  ;;  %v692_v5 = vld [vmem:[#allocation8 + $0xb58] sm:$0xff]  ;;  %v2507_v9 = vpack.c.bf16 %v700_v2, %v697_v1  ;;  %v325_v33 = vmul.f32 %v2615_v8, %v2989_v32  ;;  %v723_v1 = vld [vmem:[#allocation8 + $0xc50] sm:$0xff] }
 0x113   :  { %2254 = vmatpush1.bf16.msra.mxu0 %v2253_v7  ;;  %v699_v7 = vld [vmem:[#allocation8 + $0xb90] sm:$0xff]  ;;  %v2273_v12 = vpack.c.bf16 %v692_v5, %v689_v4  ;;  %v716_v0 = vld [vmem:[#allocation8 + $0xc18] sm:$0xff]  ;;  %v721_v4 = vld [vmem:[#allocation8 + $0xc40] sm:$0xff] }
 0x114   :  { %2256 = vmatprep.subr.bf16.mxu0 %v2255_v10  ;;  %1598 = vmatmul.mubr.f32.vlgmr.msra.gmra.mrb[6].mxu1 %v2952_v18  ;;  %v2263_v18 = vpack.c.bf16 %v681_v41, %v678_v38  ;;  %v649_v10 = vld [vmem:[#allocation8 + $0xa00] sm:$0xff]  ;;  %v2275_v17 = vpack.c.bf16 %v699_v7, %v696_v30  ;;  %v712_v38 = vld [vmem:[#allocation8 + $0xbf8] sm:$0xff]  ;;  %v2996_v47 = vmul.f32 %v325_v33, %v2984_v52  ;;  %v775_v30 = vld [vmem:[#allocation8 + $0xdf0] sm:$0xff] }
 0x115   :  { %2490 = vmatpush3.bf16.msra.mxu1 %v2489_v21  ;;  %1667 = vmatprep.mubr.f32.mxu1 %v2980_v45  ;;  %v637_v45 = vld [vmem:[#allocation8 + $0x9a0] sm:$0xff]  ;;  %v703_v21 = vld [vmem:[#allocation8 + $0xbb0] sm:$0xff]  ;;  %v2509_v27 = vpack.c.bf16 %v652_v11, %v649_v10  ;;  %v724_v5 = vld [vmem:[#allocation8 + $0xc58] sm:$0xff] }
 0x116   :  { %2492 = vmatprep.subr.bf16.mxu1 %v2491_v24  ;;  %v2501_v39 = vpack.c.bf16 %v640_v40, %v637_v45  ;;  %v695_v24 = vld [vmem:[#allocation8 + $0xb70] sm:$0xff]  ;;  %v710_v45 = vld [vmem:[#allocation8 + $0xbe8] sm:$0xff]  ;;  %v3000_v52 = vrot.slane %v2996_v47, %v2881_v31  ;;  %v2525_v11 = vpack.c.bf16 %v724_v5, %v721_v4  ;;  %v725_v33 = vld [vmem:[#allocation8 + $0xc60] sm:$0xff] }
 0x117   :  { %2258 = vmatpush1.bf16.msra.mxu0 %v2257_v28  ;;  %v702_v28 = vld [vmem:[#allocation8 + $0xba8] sm:$0xff]  ;;  %v2277_v14 = vpack.c.bf16 %v698_v26, %v695_v24  ;;  %v753_v4 = vld [vmem:[#allocation8 + $0xd40] sm:$0xff] }
 0x118   :  { %2260 = vmatprep.subr.bf16.mxu0 %v2259_v25  ;;  %v2511_v25 = vpack.c.bf16 %v706_v16, %v703_v21  ;;  %v2279_v41 = vpack.c.bf16 %v705_v29, %v702_v28  ;;  %v941_v2 = vcombine.high %v3000_v52, %v3000_v52  ;;  %v778_v7 = vld [vmem:[#allocation8 + $0xe08] sm:$0xff]  ;;  %v729_v21 = vld [vmem:[#allocation8 + $0xc80] sm:$0xff]  ;;  %v784_v28 = vld [vmem:[#allocation8 + $0xe38] sm:$0xff] }
 0x119   :  { %2494 = vmatpush3.bf16.msra.mxu1 %v2493_v37  ;;  %v709_v37 = vld [vmem:[#allocation8 + $0xbe0] sm:$0xff]  ;;  %v722_v10 = vld [vmem:[#allocation8 + $0xc48] sm:$0xff]  ;;  %v2527_v16 = vpack.c.bf16 %v778_v7, %v775_v30 }
 0x11a   :  { %2496 = vmatprep.subr.bf16.mxu1 %v2495_v42  ;;  %v701_v42 = vld [vmem:[#allocation8 + $0xba0] sm:$0xff]  ;;  %v2515_v32 = vpack.c.bf16 %v712_v38, %v709_v37  ;;  %v730_v24 = vld [vmem:[#allocation8 + $0xc88] sm:$0xff]  ;;  %v736_v38 = vld [vmem:[#allocation8 + $0xcb8] sm:$0xff] }
 0x11b   :  { %2262 = vmatpush1.bf16.msra.mxu0 %v2261_v46  ;;  %v708_v46 = vld [vmem:[#allocation8 + $0xbd8] sm:$0xff]  ;;  %v2281_v49 = vpack.c.bf16 %v704_v43, %v701_v42  ;;  %v787_v42 = vld [vmem:[#allocation8 + $0xe50] sm:$0xff]  ;;  %v790_v43 = vld [vmem:[#allocation8 + $0xe68] sm:$0xff] }
 0x11c   :  { %2264 = vmatprep.subr.bf16.mxu0 %v2263_v18  ;;  %v661_v18 = vld [vmem:[#allocation8 + $0xa60] sm:$0xff]  ;;  %v2283_v53 = vpack.c.bf16 %v711_v22, %v708_v46  ;;  %v731_v46 = vld [vmem:[#allocation8 + $0xc90] sm:$0xff]  ;;  %v734_v22 = vld [vmem:[#allocation8 + $0xca8] sm:$0xff] }
 0x11d   :  { %2498 = vmatpush3.bf16.msra.mxu1 %v2497_v50  ;;  %v763_v50 = vld [vmem:[#allocation8 + $0xd90] sm:$0xff]  ;;  %v2517_v40 = vpack.c.bf16 %v664_v48, %v661_v18  ;;  %v738_v18 = vld [vmem:[#allocation8 + $0xcc8] sm:$0xff]  ;;  %v741_v48 = vld [vmem:[#allocation8 + $0xce0] sm:$0xff] }
 0x11e   :  { %2500 = vmatprep.subr.bf16.mxu1 %v2499_v54  ;;  %v707_v54 = vld [vmem:[#allocation8 + $0xbd0] sm:$0xff]  ;;  %v2519_v56 = vpack.c.bf16 %v766_v51, %v763_v50  ;;  %v742_v51 = vld [vmem:[#allocation8 + $0xce8] sm:$0xff] }
 0x11f   :  { %2266 = vmatpush1.bf16.msra.mxu0 %v2265_v55  ;;  %v714_v55 = vld [vmem:[#allocation8 + $0xc08] sm:$0xff]  ;;  %v2285_v60 = vpack.c.bf16 %v710_v45, %v707_v54  ;;  %v739_v50 = vld [vmem:[#allocation8 + $0xcd0] sm:$0xff]  ;;  %v793_v54 = vld [vmem:[#allocation8 + $0xe80] sm:$0xff] }
 0x120   :  { %2268 = vmatprep.subr.bf16.mxu0 %v2267_v57  ;;  %v715_v57 = vld [vmem:[#allocation8 + $0xc10] sm:$0xff]  ;;  %v2287_v62 = vpack.c.bf16 %v717_v34, %v714_v55  ;;  %v796_v45 = vld [vmem:[#allocation8 + $0xe98] sm:$0xff]  ;;  %v737_v55 = vld [vmem:[#allocation8 + $0xcc0] sm:$0xff] }
 0x121   :  { %2502 = vmatpush3.bf16.msra.mxu1 %v2501_v39  ;;  %v769_v39 = vld [vmem:[#allocation8 + $0xdc0] sm:$0xff]  ;;  %v2521_v23 = vpack.c.bf16 %v718_v58, %v715_v57  ;;  %v740_v34 = vld [vmem:[#allocation8 + $0xcd8] sm:$0xff]  ;;  %v747_v58 = vld [vmem:[#allocation8 + $0xd10] sm:$0xff] }
 0x122   :  { %2504 = vmatprep.subr.bf16.mxu1 %v2503_v63  ;;  %v713_v63 = vld [vmem:[#allocation8 + $0xc00] sm:$0xff]  ;;  %v744_v57 = vld [vmem:[#allocation8 + $0xcf8] sm:$0xff]  ;;  %v754_v30 = vld [vmem:[#allocation8 + $0xd48] sm:$0xff] }
 0x123   :  { %2270 = vmatpush1.bf16.msra.mxu0 %v2269_v59  ;;  %v720_v59 = vld [vmem:[#allocation8 + $0xc38] sm:$0xff] }
 0x124   :  { %2272 = vmatprep.subr.bf16.mxu0 %v2271_v3  ;;  %v2523_v3 = vpack.c.bf16 %v772_v61, %v769_v39  ;;  %v2291_v8 = vpack.c.bf16 %v723_v1, %v720_v59  ;;  %v745_v39 = vld [vmem:[#allocation8 + $0xd00] sm:$0xff]  ;;  %v748_v61 = vld [vmem:[#allocation8 + $0xd18] sm:$0xff]  ;;  %v743_v59 = vld [vmem:[#allocation8 + $0xcf0] sm:$0xff] }
 0x125   :  { %2506 = vmatpush3.bf16.msra.mxu1 %v2505_v6  ;;  %v2289_v6 = vpack.c.bf16 %v716_v0, %v713_v63  ;;  %v799_v63 = vld [vmem:[#allocation8 + $0xeb0] sm:$0xff]  ;;  %v802_v0 = vld [vmem:[#allocation8 + $0xec8] sm:$0xff] }
 0x126   :  { %2508 = vmatprep.subr.bf16.mxu1 %v2507_v9  ;;  %v719_v9 = vld [vmem:[#allocation8 + $0xc30] sm:$0xff]  ;;  %v746_v1 = vld [vmem:[#allocation8 + $0xd08] sm:$0xff]  ;;  %v2543_v5 = vpack.c.bf16 %v802_v0, %v799_v63  ;;  %v780_v63 = vld [vmem:[#allocation8 + $0xe18] sm:$0xff] }
 0x127   :  { %2274 = vmatpush1.bf16.msra.mxu0 %v2273_v12  ;;  %v726_v12 = vld [vmem:[#allocation8 + $0xc68] sm:$0xff]  ;;  %v2293_v26 = vpack.c.bf16 %v722_v10, %v719_v9  ;;  %v2309_v7 = vpack.c.bf16 %v746_v1, %v743_v59  ;;  %v808_v9 = vld [vmem:[#allocation8 + $0xef8] sm:$0xff]  ;;  %v783_v0 = vld [vmem:[#allocation8 + $0xe30] sm:$0xff] }
 0x128   :  { %2276 = vmatprep.subr.bf16.mxu0 %v2275_v17  ;;  %v727_v17 = vld [vmem:[#allocation8 + $0xc70] sm:$0xff]  ;;  %v2295_v29 = vpack.c.bf16 %v729_v21, %v726_v12  ;;  %v752_v12 = vld [vmem:[#allocation8 + $0xd38] sm:$0xff] }
 0x129   :  { %2510 = vmatpush3.bf16.msra.mxu1 %v2509_v27  ;;  %v781_v27 = vld [vmem:[#allocation8 + $0xe20] sm:$0xff]  ;;  %v2529_v35 = vpack.c.bf16 %v730_v24, %v727_v17  ;;  %v759_v17 = vld [vmem:[#allocation8 + $0xd70] sm:$0xff]  ;;  %v926_v24 = vcombine.high %v2996_v47, %v2996_v47  ;;  %v814_v47 = vld [vmem:[#allocation8 + $0xf28] sm:$0xff] }
 0x12a   :  { %2512 = vmatprep.subr.bf16.mxu1 %v2511_v25  ;;  %v728_v25 = vld [vmem:[#allocation8 + $0xc78] sm:$0xff]  ;;  %v2531_v37 = vpack.c.bf16 %v784_v28, %v781_v27  ;;  %v757_v27 = vld [vmem:[#allocation8 + $0xd60] sm:$0xff] }
 0x12b   :  { %2278 = vmatpush1.bf16.msra.mxu0 %v2277_v14  ;;  %v735_v14 = vld [vmem:[#allocation8 + $0xcb0] sm:$0xff]  ;;  %v760_v28 = vld [vmem:[#allocation8 + $0xd78] sm:$0xff] }
 0x12c   :  { %2280 = vmatprep.subr.bf16.mxu0 %v2279_v41  ;;  %v2297_v41 = vpack.c.bf16 %v728_v25, %v725_v33  ;;  %v755_v25 = vld [vmem:[#allocation8 + $0xd50] sm:$0xff]  ;;  %v832_v59 = vld [vmem:[#allocation8 + $0xfb8] sm:$0xff] }
 0x12d   :  { %2514 = vmatpush3.bf16.msra.mxu1 %v2513_v44  ;;  %v2299_v44 = vpack.c.bf16 %v735_v14, %v732_v36  ;;  %v2549_v36 = vpack.c.bf16 %v760_v28, %v757_v27  ;;  %v762_v14 = vld [vmem:[#allocation8 + $0xd88] sm:$0xff] }
 0x12e   :  { %2516 = vmatprep.subr.bf16.mxu1 %v2515_v32 }
 0x12f   :  { %2282 = vmatpush1.bf16.msra.mxu0 %v2281_v49  ;;  %v2535_v49 = vpack.c.bf16 %v790_v43, %v787_v42  ;;  %v761_v43 = vld [vmem:[#allocation8 + $0xd80] sm:$0xff] }
 0x130   :  { %2284 = vmatprep.subr.bf16.mxu0 %v2283_v53  ;;  %v2301_v53 = vpack.c.bf16 %v734_v22, %v731_v46  ;;  %v768_v22 = vld [vmem:[#allocation8 + $0xdb8] sm:$0xff] }
 0x131   :  { %2518 = vmatpush3.bf16.msra.mxu1 %v2517_v40  ;;  %v2303_v40 = vpack.c.bf16 %v741_v48, %v738_v18  ;;  %v2764_v48 = vmov 0.0|0.0  }
 0x132   :  { %2520 = vmatprep.subr.bf16.mxu1 %v2519_v56  ;;  %v2537_v56 = vpack.c.bf16 %v742_v51, %v739_v50  ;;  %v820_v50 = vld [vmem:[#allocation8 + $0xf58] sm:$0xff] }
 0x133   :  { %2286 = vmatpush1.bf16.msra.mxu0 %v2285_v60  ;;  %v2539_v60 = vpack.c.bf16 %v796_v45, %v793_v54  ;;  %v767_v54 = vld [vmem:[#allocation8 + $0xdb0] sm:$0xff]  ;;  %v770_v45 = vld [vmem:[#allocation8 + $0xdc8] sm:$0xff] }
 0x134   :  { %2288 = vmatprep.subr.bf16.mxu0 %v2287_v62  ;;  %1668 = vmatmul.mubr.f32.vlgmr.msra.gmra.mrb[8].mxu1 %v2972_v15  ;;  %v2305_v62 = vpack.c.bf16 %v740_v34, %v737_v55  ;;  %v774_v55 = vld [vmem:[#allocation8 + $0xde8] sm:$0xff]  ;;  %v777_v34 = vld [vmem:[#allocation8 + $0xe00] sm:$0xff] }
 0x135   :  { %2522 = vmatpush3.bf16.msra.mxu1 %v2521_v23  ;;  %1737 = vmatprep.mubr.f32.mxu1 %v941_v2  ;;  %v2307_v23 = vpack.c.bf16 %v747_v58, %v744_v57  ;;  %v826_v57 = vld [vmem:[#allocation8 + $0xf88] sm:$0xff]  ;;  %v2325_v58 = vpack.c.bf16 %v770_v45, %v767_v54 }
 0x136   :  { %1245 = vmatmul.mubr.f32.vlgmr.msra.gmra.mrb[0].mxu0 %v2972_v15  ;;  %2524 = vmatprep.subr.bf16.mxu1 %v2523_v3  ;;  %v733_v15 = vld [vmem:[#allocation8 + $0xca0] sm:$0xff]  ;;  %v750_v3 = vld [vmem:[#allocation8 + $0xd28] sm:$0xff] }
 0x137   :  { %2290 = vmatpush1.bf16.msra.mxu0 %v2289_v6  ;;  %1315 = vmatprep.mubr.f32.mxu0 %v941_v2  ;;  %v2533_v32 = vpack.c.bf16 %v736_v38, %v733_v15  ;;  %v2541_v2 = vpack.c.bf16 %v748_v61, %v745_v39  ;;  %v751_v6 = vld [vmem:[#allocation8 + $0xd30] sm:$0xff]  ;;  %v2311_v10 = vpack.c.bf16 %v753_v4, %v750_v3  ;;  %v773_v39 = vld [vmem:[#allocation8 + $0xde0] sm:$0xff]  ;;  %v776_v61 = vld [vmem:[#allocation8 + $0xdf8] sm:$0xff] }
 0x138   :  { %2292 = vmatprep.subr.bf16.mxu0 %v2291_v8  ;;  %v805_v8 = vld [vmem:[#allocation8 + $0xee0] sm:$0xff]  ;;  %v2545_v21 = vpack.c.bf16 %v754_v30, %v751_v6  ;;  %v3009_v15 = vrot.slane %v926_v24, %v2881_v31  ;;  %v811_v38 = vld [vmem:[#allocation8 + $0xf10] sm:$0xff]  ;;  %v2329_v1 = vpack.c.bf16 %v776_v61, %v773_v39  ;;  %v782_v4 = vld [vmem:[#allocation8 + $0xe28] sm:$0xff] }
 0x139   :  { %2526 = vmatpush3.bf16.msra.mxu1 %v2525_v11  ;;  %v749_v11 = vld [vmem:[#allocation8 + $0xd20] sm:$0xff]  ;;  %v2552_v46 = vpack.c.bf16 %v814_v47, %v811_v38  ;;  %v779_v3 = vld [vmem:[#allocation8 + $0xe10] sm:$0xff]  ;;  %v786_v6 = vld [vmem:[#allocation8 + $0xe48] sm:$0xff] }
 0x13a   :  { %2528 = vmatprep.subr.bf16.mxu1 %v2527_v16  ;;  %v756_v16 = vld [vmem:[#allocation8 + $0xd58] sm:$0xff]  ;;  %v3013_v18 = vcombine.high %v3009_v15, %v3009_v15  ;;  %v789_v30 = vld [vmem:[#allocation8 + $0xe60] sm:$0xff]  ;;  %v810_v45 = vld [vmem:[#allocation8 + $0xf08] sm:$0xff] }
 0x13b   :  { %2294 = vmatpush1.bf16.msra.mxu0 %v2293_v26  ;;  %v2547_v26 = vpack.c.bf16 %v808_v9, %v805_v8  ;;  %v2315_v33 = vpack.c.bf16 %v759_v17, %v756_v16  ;;  %v838_v8 = vld [vmem:[#allocation8 + $0xfe8] sm:$0xff]  ;;  %v2333_v9 = vpack.c.bf16 %v782_v4, %v779_v3  ;;  %v792_v16 = vld [vmem:[#allocation8 + $0xe78] sm:$0xff]  ;;  %v795_v17 = vld [vmem:[#allocation8 + $0xe90] sm:$0xff] }
 0x13c   :  { %2296 = vmatprep.subr.bf16.mxu0 %v2295_v29  ;;  %v2313_v29 = vpack.c.bf16 %v752_v12, %v749_v11  ;;  %v785_v11 = vld [vmem:[#allocation8 + $0xe40] sm:$0xff]  ;;  %v788_v12 = vld [vmem:[#allocation8 + $0xe58] sm:$0xff]  ;;  %v2339_v28 = vpack.c.bf16 %v795_v17, %v792_v16  ;;  %v822_v4 = vld [vmem:[#allocation8 + $0xf68] sm:$0xff] }
 0x13d   :  { %2530 = vmatpush3.bf16.msra.mxu1 %v2529_v35  ;;  %v758_v35 = vld [vmem:[#allocation8 + $0xd68] sm:$0xff]  ;;  %v841_v24 = vld [vmem:[#allocation8 + $0x1000] sm:$0xff]  ;;  %v2337_v27 = vpack.c.bf16 %v788_v12, %v785_v11  ;;  %v816_v61 = vld [vmem:[#allocation8 + $0xf38] sm:$0xff]  ;;  %v2765_v11 = vmov 0.0  }
 0x13e   :  { %2532 = vmatprep.subr.bf16.mxu1 %v2531_v37  ;;  %v765_v37 = vld [vmem:[#allocation8 + $0xda0] sm:$0xff]  ;;  %v871_v12 = vld [vmem:[#allocation8 + $0x10f0] sm:$0xf]  ;;  %v830_v16 = vld [vmem:[#allocation8 + $0xfa8] sm:$0xff] }
 0x13f   :  { %2298 = vmatpush1.bf16.msra.mxu0 %v2297_v41  ;;  %v2317_v41 = vpack.c.bf16 %v758_v35, %v755_v25  ;;  %v2319_v42 = vpack.c.bf16 %v765_v37, %v762_v14  ;;  %v798_v35 = vld [vmem:[#allocation8 + $0xea8] sm:$0xff]  ;;  %v847_v14 = vld [vmem:[#allocation8 + $0x1030] sm:$0xff]  ;;  %v837_v17 = vld [vmem:[#allocation8 + $0xfe0] sm:$0xff] }
 0x140   :  { %2300 = vmatprep.subr.bf16.mxu0 %v2299_v44  ;;  %v764_v44 = vld [vmem:[#allocation8 + $0xd98] sm:$0xff]  ;;  %v850_v37 = vld [vmem:[#allocation8 + $0x1048] sm:$0xff] }
 0x141   :  { %2534 = vmatpush3.bf16.msra.mxu1 %v2533_v32  ;;  %v771_v32 = vld [vmem:[#allocation8 + $0xdd0] sm:$0xff]  ;;  %v2321_v51 = vpack.c.bf16 %v764_v44, %v761_v43  ;;  %v2570_v43 = vpack.c.bf16 %v850_v37, %v847_v14  ;;  %v804_v44 = vld [vmem:[#allocation8 + $0xed8] sm:$0xff]  ;;  %v842_v14 = vld [vmem:[#allocation8 + $0x1008] sm:$0xff] }
 0x142   :  { %2536 = vmatprep.subr.bf16.mxu1 %v2535_v49  ;;  %v817_v49 = vld [vmem:[#allocation8 + $0xf40] sm:$0xff]  ;;  %v846_v37 = vld [vmem:[#allocation8 + $0x1028] sm:$0xff] }
 0x143   :  { %2302 = vmatpush1.bf16.msra.mxu0 %v2301_v53  ;;  %v2323_v53 = vpack.c.bf16 %v771_v32, %v768_v22  ;;  %v853_v22 = vld [vmem:[#allocation8 + $0x1060] sm:$0xff]  ;;  %v856_v32 = vld [vmem:[#allocation8 + $0x1078] sm:$0xff] }
 0x144   :  { %2304 = vmatprep.subr.bf16.mxu0 %v2303_v40  ;;  %v2555_v40 = vpack.c.bf16 %v820_v50, %v817_v49  ;;  %v2573_v54 = vpack.c.bf16 %v856_v32, %v853_v22  ;;  %v852_v22 = vld [vmem:[#allocation8 + $0x1058] sm:$0xff]  ;;  %v855_v32 = vld [vmem:[#allocation8 + $0x1070] sm:$0xff] }
 0x145   :  { %2538 = vmatpush3.bf16.msra.mxu1 %v2537_v56  ;;  %v823_v56 = vld [vmem:[#allocation8 + $0xf70] sm:$0xff] }
 0x146   :  { %2540 = vmatprep.subr.bf16.mxu1 %v2539_v60  ;;  %v2327_v60 = vpack.c.bf16 %v777_v34, %v774_v55  ;;  %v859_v55 = vld [vmem:[#allocation8 + $0x1090] sm:$0xff]  ;;  %v862_v34 = vld [vmem:[#allocation8 + $0x10a8] sm:$0xff] }
 0x147   :  { %2306 = vmatpush1.bf16.msra.mxu0 %v2305_v62  ;;  %v2558_v62 = vpack.c.bf16 %v826_v57, %v823_v56  ;;  %v2576_v39 = vpack.c.bf16 %v862_v34, %v859_v55  ;;  %v857_v34 = vld [vmem:[#allocation8 + $0x1080] sm:$0xff] }
 0x148   :  { %2308 = vmatprep.subr.bf16.mxu0 %v2307_v23  ;;  %v829_v23 = vld [vmem:[#allocation8 + $0xfa0] sm:$0xff] }
 0x149   :  { %2542 = vmatpush3.bf16.msra.mxu1 %v2541_v2  ;;  %v2331_v2 = vpack.c.bf16 %v783_v0, %v780_v63  ;;  %v865_v63 = vld [vmem:[#allocation8 + $0x10c0] sm:$0xff]  ;;  %v868_v0 = vld [vmem:[#allocation8 + $0x10d8] sm:$0xff] }
 0x14a   :  { %2544 = vmatprep.subr.bf16.mxu1 %v2543_v5  ;;  %v2561_v5 = vpack.c.bf16 %v832_v59, %v829_v23  ;;  %v2579_v3 = vpack.c.bf16 %v868_v0, %v865_v63  ;;  %v870_v0 = vld [vmem:[#allocation8 + $0x10e8] sm:$0xf] }
 0x14b   :  { %2310 = vmatpush1.bf16.msra.mxu0 %v2309_v7  ;;  %v835_v7 = vld [vmem:[#allocation8 + $0xfd0] sm:$0xff] }
 0x14c   :  { %2312 = vmatprep.subr.bf16.mxu0 %v2311_v10  ;;  %v2335_v10 = vpack.c.bf16 %v789_v30, %v786_v6 }
 0x14d   :  { %2546 = vmatpush3.bf16.msra.mxu1 %v2545_v21  ;;  %v2564_v21 = vpack.c.bf16 %v838_v8, %v835_v7  ;;  %v821_v7 = vld [vmem:[#allocation8 + $0xf60] sm:$0xff]  ;;  %v824_v8 = vld [vmem:[#allocation8 + $0xf78] sm:$0xff] }
 0x14e   :  { %2548 = vmatprep.subr.bf16.mxu1 %v2547_v26  ;;  %v844_v26 = vld [vmem:[#allocation8 + $0x1018] sm:$0xff] }
 0x14f   :  { %2314 = vmatpush1.bf16.msra.mxu0 %v2313_v29  ;;  %v791_v29 = vld [vmem:[#allocation8 + $0xe70] sm:$0xff]  ;;  %v2567_v25 = vpack.c.bf16 %v844_v26, %v841_v24 }
 0x150   :  { %2316 = vmatprep.subr.bf16.mxu0 %v2315_v33  ;;  %v794_v33 = vld [vmem:[#allocation8 + $0xe88] sm:$0xff] }
 0x151   :  { %2550 = vmatpush3.bf16.msra.mxu1 %v2549_v36  ;;  %v801_v36 = vld [vmem:[#allocation8 + $0xec0] sm:$0xff]  ;;  %v2341_v38 = vpack.c.bf16 %v794_v33, %v791_v29  ;;  %v840_v29 = vld [vmem:[#allocation8 + $0xff8] sm:$0xff]  ;;  %v843_v33 = vld [vmem:[#allocation8 + $0x1010] sm:$0xff] }
 0x152   :  { %2551 = vmatprep.subr.bf16.mxu1 %v2764_v48  ;;  %v2343_v47 = vpack.c.bf16 %v801_v36, %v798_v35  ;;  %v2371_v35 = vpack.c.bf16 %v843_v33, %v840_v29  ;;  %v839_v36 = vld [vmem:[#allocation8 + $0xff0] sm:$0xff] }
 0x153   :  { %2318 = vmatpush1.bf16.msra.mxu0 %v2317_v41  ;;  %v797_v41 = vld [vmem:[#allocation8 + $0xea0] sm:$0xff] }
 0x154   :  { %2320 = vmatprep.subr.bf16.mxu0 %v2319_v42  ;;  %1738 = vmatmul.mubr.f32.vlgmr.msra.gmra.mrb[10].mxu1 %v3000_v52  ;;  %v800_v42 = vld [vmem:[#allocation8 + $0xeb8] sm:$0xff] }
 0x155   :  { %2553 = vmatpush1.bf16.msra.mxu1 %v2552_v46  ;;  %1855 = vmatprep.mubr.msk.f32.mxu1 %vm954_vm0, %v3013_v18  ;;  %v807_v46 = vld [vmem:[#allocation8 + $0xef0] sm:$0xff]  ;;  %v2345_v49 = vpack.c.bf16 %v800_v42, %v797_v41 }
 0x156   :  { %2554 = vmatprep.subr.bf16.mxu1 %v2764_v48  ;;  %v2347_v50 = vpack.c.bf16 %v807_v46, %v804_v44  ;;  %v848_v44 = vld [vmem:[#allocation8 + $0x1038] sm:$0xff] }
 0x157   :  { %2322 = vmatpush1.bf16.msra.mxu0 %v2321_v51  ;;  %v803_v51 = vld [vmem:[#allocation8 + $0xed0] sm:$0xff] }
 0x158   :  { %2324 = vmatprep.subr.bf16.mxu0 %v2323_v53  ;;  %v806_v53 = vld [vmem:[#allocation8 + $0xee8] sm:$0xff] }
 0x159   :  { %2556 = vmatpush1.bf16.msra.mxu1 %v2555_v40  ;;  %v813_v40 = vld [vmem:[#allocation8 + $0xf20] sm:$0xff]  ;;  %v2349_v56 = vpack.c.bf16 %v806_v53, %v803_v51  ;;  %v851_v51 = vld [vmem:[#allocation8 + $0x1050] sm:$0xff]  ;;  %v854_v53 = vld [vmem:[#allocation8 + $0x1068] sm:$0xff] }
 0x15a   :  { %2557 = vmatprep.subr.bf16.mxu1 %v2764_v48  ;;  %v2351_v57 = vpack.c.bf16 %v813_v40, %v810_v45  ;;  %v861_v45 = vld [vmem:[#allocation8 + $0x10a0] sm:$0xff]  ;;  %v2381_v40 = vpack.c.bf16 %v854_v53, %v851_v51 }
 0x15b   :  { %2326 = vmatpush1.bf16.msra.mxu0 %v2325_v58  ;;  %v809_v58 = vld [vmem:[#allocation8 + $0xf00] sm:$0xff] }
 0x15c   :  { %2328 = vmatprep.subr.bf16.mxu0 %v2327_v60  ;;  %v812_v60 = vld [vmem:[#allocation8 + $0xf18] sm:$0xff] }
 0x15d   :  { %2559 = vmatpush1.bf16.msra.mxu1 %v2558_v62  ;;  %v819_v62 = vld [vmem:[#allocation8 + $0xf50] sm:$0xff]  ;;  %v2353_v23 = vpack.c.bf16 %v812_v60, %v809_v58 }
 0x15e   :  { %2560 = vmatprep.subr.bf16.mxu1 %v2764_v48  ;;  %v2355_v59 = vpack.c.bf16 %v819_v62, %v816_v61  ;;  %v867_v58 = vld [vmem:[#allocation8 + $0x10d0] sm:$0xff]  ;;  %v866_v62 = vld [vmem:[#allocation8 + $0x10c8] sm:$0xff] }
 0x15f   :  { %2330 = vmatpush1.bf16.msra.mxu0 %v2329_v1  ;;  %v815_v1 = vld [vmem:[#allocation8 + $0xf30] sm:$0xff] }
 0x160   :  { %2332 = vmatprep.subr.bf16.mxu0 %v2331_v2  ;;  %v818_v2 = vld [vmem:[#allocation8 + $0xf48] sm:$0xff]  ;;  %v863_v61 = vld [vmem:[#allocation8 + $0x10b0] sm:$0xff] }
 0x161   :  { %2562 = vmatpush1.bf16.msra.mxu1 %v2561_v5  ;;  %v825_v5 = vld [vmem:[#allocation8 + $0xf80] sm:$0xff]  ;;  %v2357_v6 = vpack.c.bf16 %v818_v2, %v815_v1  ;;  %v2389_v63 = vpack.c.bf16 %v866_v62, %v863_v61 }
 0x162   :  { %2563 = vmatprep.subr.bf16.mxu1 %v2764_v48  ;;  %v2359_v30 = vpack.c.bf16 %v825_v5, %v822_v4 }
 0x163   :  { %2334 = vmatpush1.bf16.msra.mxu0 %v2333_v9  ;;  %v828_v9 = vld [vmem:[#allocation8 + $0xf98] sm:$0xff] }
 0x164   :  { %2336 = vmatprep.subr.bf16.mxu0 %v2335_v10  ;;  %v831_v10 = vld [vmem:[#allocation8 + $0xfb0] sm:$0xff] }
 0x165   :  { %2565 = vmatpush1.bf16.msra.mxu1 %v2564_v21  ;;  %v827_v21 = vld [vmem:[#allocation8 + $0xf90] sm:$0xff] }
 0x166   :  { %2566 = vmatprep.subr.bf16.mxu1 %v2764_v48  ;;  %v2365_v24 = vpack.c.bf16 %v830_v16, %v827_v21 }
 0x167   :  { %2338 = vmatpush1.bf16.msra.mxu0 %v2337_v27  ;;  %v833_v27 = vld [vmem:[#allocation8 + $0xfc0] sm:$0xff] }
 0x168   :  { %2340 = vmatprep.subr.bf16.mxu0 %v2339_v28  ;;  %v836_v28 = vld [vmem:[#allocation8 + $0xfd8] sm:$0xff] }
 0x169   :  { %2568 = vmatpush1.bf16.msra.mxu1 %v2567_v25  ;;  %v2369_v25 = vpack.c.bf16 %v836_v28, %v833_v27 }
 0x16a   :  { %2569 = vmatprep.subr.bf16.mxu1 %v2764_v48 }
 0x16b   :  { %2342 = vmatpush1.bf16.msra.mxu0 %v2341_v38  ;;  %v849_v38 = vld [vmem:[#allocation8 + $0x1040] sm:$0xff] }
 0x16c   :  { %2344 = vmatprep.subr.bf16.mxu0 %v2343_v47  ;;  %v2373_v47 = vpack.c.bf16 %v842_v14, %v839_v36  ;;  %v2375_v42 = vpack.c.bf16 %v849_v38, %v846_v37 }
 0x16d   :  { %2571 = vmatpush1.bf16.msra.mxu1 %v2570_v43  ;;  %v845_v43 = vld [vmem:[#allocation8 + $0x1020] sm:$0xff] }
 0x16e   :  { %2572 = vmatprep.subr.bf16.mxu1 %v2764_v48 }
 0x16f   :  { %2346 = vmatpush1.bf16.msra.mxu0 %v2345_v49  ;;  %v2377_v49 = vpack.c.bf16 %v848_v44, %v845_v43 }
 0x170   :  { %2348 = vmatprep.subr.bf16.mxu0 %v2347_v50  ;;  %v2379_v50 = vpack.c.bf16 %v855_v32, %v852_v22 }
 0x171   :  { %2574 = vmatpush1.bf16.msra.mxu1 %v2573_v54  ;;  %v858_v54 = vld [vmem:[#allocation8 + $0x1088] sm:$0xff] }
 0x172   :  { %2575 = vmatprep.subr.bf16.mxu1 %v2764_v48  ;;  %v2383_v55 = vpack.c.bf16 %v861_v45, %v858_v54 }
 0x173   :  { %2350 = vmatpush1.bf16.msra.mxu0 %v2349_v56  ;;  %v860_v56 = vld [vmem:[#allocation8 + $0x1098] sm:$0xff] }
 0x174   :  { %2352 = vmatprep.subr.bf16.mxu0 %v2351_v57  ;;  %v864_v57 = vld [vmem:[#allocation8 + $0x10b8] sm:$0xff]  ;;  %v2385_v60 = vpack.c.bf16 %v860_v56, %v857_v34 }
 0x175   :  { %2577 = vmatpush1.bf16.msra.mxu1 %v2576_v39  ;;  %v2387_v39 = vpack.c.bf16 %v867_v58, %v864_v57 }
 0x176   :  { %1316 = vmatmul.mubr.f32.vlgmr.msra.gmra.mrb[0].mxu0 %v3000_v52  ;;  %2578 = vmatprep.subr.bf16.mxu1 %v2764_v48  ;;  %v2361_v52 = vpack.c.bf16 %v824_v8, %v821_v7  ;;  %v2363_v48 = vpack.c.bf16 %v831_v10, %v828_v9 }
 0x177   :  { %2354 = vmatpush1.bf16.msra.mxu0 %v2353_v23  ;;  %1853 = vmatprep.mubr.msk.f32.mxu0 %vm954_vm0, %v3013_v18  ;;  %v834_v18 = vld [vmem:[#allocation8 + $0xfc8] sm:$0xff]  ;;  %v869_v23 = vld [vmem:[#allocation8 + $0x10e0] sm:$0xf] }
 0x178   :  { %2356 = vmatprep.subr.bf16.mxu0 %v2355_v59  ;;  %v2367_v26 = vpack.c.bf16 %v837_v17, %v834_v18 }
 0x179   :  { %2580 = vmatpush1.bf16.msra.mxu1 %v2579_v3  ;;  %v872_v3 = vld [vmem:[#allocation10] sm:$0x7] }
 0x17a   :  { %1783 = vmatprep.subr.mxu1 %v2765_v11  ;;  %v885_v4 = vrot.slane %v872_v3, %v2873_v20  ;;  %v877_v28 = vrot.slane %v872_v3, %v2867_v13  ;;  %v881_v29 = vrot.slane %v872_v3, %v2870_v19 }
 0x17b   :  { %2358 = vmatpush1.bf16.msra.mxu0 %v2357_v6 }
 0x17c   :  { %2360 = vmatprep.subr.bf16.mxu0 %v2359_v30 }
 0x17d   :  { %1854 = vmatpush1.msk.msra.mxu1 %vm957_vm1, %v871_v12 }
 0x17e   :  { %1808 = vmatmul.mubr.f32.vlgmr.msra.gmra.mrb[12].mxu1 %v3009_v15 }
 0x17f   :  { %2362 = vmatpush1.bf16.msra.mxu0 %v2361_v52 }
 0x180   :  { %2364 = vmatprep.subr.bf16.mxu0 %v2363_v48 }
 0x183   :  { %2366 = vmatpush1.bf16.msra.mxu0 %v2365_v24 }
 0x184   :  { %2368 = vmatprep.subr.bf16.mxu0 %v2367_v26 }
 0x187   :  { %2370 = vmatpush1.bf16.msra.mxu0 %v2369_v25  ;;  %v3033_v41 = vpop.f32.mrb[0].mxu1 }
 0x188   :  { %2372 = vmatprep.subr.bf16.mxu0 %v2371_v35  ;;  %v1035_v46 = vpop.f32.mrb[1].mxu1  ;;  %v1034_v33 = vadd.f32 %v3033_v41, %v877_v28 }
 0x189   :  { %v1036_v25 = vadd.f32 %v1035_v46, %v881_v29 }
 0x18b   :  { %2374 = vmatpush1.bf16.msra.mxu0 %v2373_v47 }
 0x18c   :  { %2376 = vmatprep.subr.bf16.mxu0 %v2375_v42 }
 0x18f   :  { %2378 = vmatpush1.bf16.msra.mxu0 %v2377_v49 }
 0x190   :  { %2380 = vmatprep.subr.bf16.mxu0 %v2379_v50 }
 0x193   :  { %2382 = vmatpush1.bf16.msra.mxu0 %v2381_v40 }
 0x194   :  { %2384 = vmatprep.subr.bf16.mxu0 %v2383_v55 }
 0x197   :  { %2386 = vmatpush1.bf16.msra.mxu0 %v2385_v60 }
 0x198   :  { %2388 = vmatprep.subr.bf16.mxu0 %v2387_v39 }
 0x19b   :  { %2390 = vmatpush1.bf16.msra.mxu0 %v2389_v63 }
 0x19c   :  { %1851 = vmatprep.subr.msk.mxu0 %vm957_vm1, %v870_v0 }
 0x19f   :  { %1852 = vmatpush1.msk.msra.mxu0 %vm957_vm1, %v869_v23 }
 0x1a0   :  { %1387 = vmatmul.mubr.f32.vlgmr.msra.gmra.mrb[0].mxu0 %v3009_v15 }
 0x1a7   :  { %v1888_v59 = vpop.f32.mrb[2].mxu1 }
 0x1a8   :  { %v1889_v1 = vpop.f32.mrb[3].mxu1 }
 0x1a9   :  { %v1890_v2 = vadd.f32 %v1889_v1, %v1888_v59 }
 0x1ab   :  { %v1460_v5 = vadd.f32 %v1890_v2, %v885_v4 }
 0x1c7   :  { %v1923_v6 = vpop.f32.mrb[4].mxu1 }
 0x1c8   :  { %v1924_v30 = vpop.f32.mrb[5].mxu1 }
 0x1c9   :  { %v1925_v7 = vadd.f32 %v1924_v30, %v1923_v6 }
 0x1cb   :  { %v1530_v8 = vadd.f32 %v1925_v7, %v1460_v5 }
 0x1e7   :  { %v1958_v9 = vpop.f32.mrb[6].mxu1 }
 0x1e8   :  { %v1959_v10 = vpop.f32.mrb[7].mxu1 }
 0x1e9   :  { %v1960_v11 = vadd.f32 %v1959_v10, %v1958_v9 }
 0x1eb   :  { %v1600_v12 = vadd.f32 %v1960_v11, %v1530_v8 }
 0x207   :  { %v1993_v52 = vpop.f32.mrb[8].mxu1 }
 0x208   :  { %v1994_v48 = vpop.f32.mrb[9].mxu1 }
 0x209   :  { %v1995_v21 = vadd.f32 %v1994_v48, %v1993_v52 }
 0x20b   :  { %v1670_v16 = vadd.f32 %v1995_v21, %v1600_v12 }
 0x227   :  { %v2028_v15 = vpop.f32.mrb[10].mxu1 }
 0x228   :  { %v2029_v18 = vpop.f32.mrb[11].mxu1 }
 0x229   :  { %v2030_v17 = vadd.f32 %v2029_v18, %v2028_v15 }
 0x22b   :  { %v1740_v24 = vadd.f32 %v2030_v17, %v1670_v16 }
 0x251   :  { %v1809_v26 = vpop.f32.mrb[12].mxu1 }
 0x252   :  { %v1810_v27 = vadd.f32 %v1809_v26, %v1740_v24  ;;  %v1811_v20 = vpop.f32.mrb[13].mxu1 }
 0x254   :  { %v1830_v47 = vrot.slane %v1810_v27, %v2881_v31 }
 0x273   :  { %v1388_v35 = vpop.f32.mrb[0].mxu0 }
 0x274   :  { %v2582_v36 = vadd.f32 %v1388_v35, %v1034_v33  ;;  %v1390_v14 = vpop.f32.mrb[1].mxu0 }
 0x275   :  { %v2584_v37 = vadd.f32 %v1390_v14, %v1036_v25 }
 0x277   :  { %v1816_v38 = vcombine.low %v2582_v36, %v2584_v37 }
 0x279   :  { %v1823_v42 = vrot.slane %v1816_v38, %v2881_v31 }
 0x27b   :  { %v1831_v43 = vcombine.low %v1823_v42, %v1830_v47 }
 0x27d   :  { %1833 = vst [vmem:[#allocation11] sm:$0x3f] %v1831_v43 }
 0x27e   :  { %2737 = shalt.err (!%p2734_p2)
}
 0x27f   :  { %s2738_s21 = scalar_lea.hbm %s3061_s5, 96 }
 0x280   :  { %p2739_p3 = scmp.ne.s32.totalorder %s3061_s5, %s2738_s21  ;;  %p2742_p4 = scmp.lt.u32.totalorder %s2738_s21, %s3061_s5 }
 0x282   :  { %p2744_p5 = pnand %p2742_p4, %p2739_p3 }
 0x284   :  { %2747 = shalt.err (!%p2744_p5)
}
 0x285   :  { %1843 = dma.vmem_to_hbm [thread:$0]  %s1841_s27, 96, %s3061_s5, [#allocation4]  }
 0x286   :  { %2754 = dma.done.wait [#allocation4], 96  }
 0x287   :  { %2755 = vsyncadd [#allocation4], 4294967200 }
 0x288   :  { %1847 = vsyncpa [#allocation3], 1 }
 0x289   :  { %1848 = vsyncpa [#allocation6], 1 }
 0x28a   :  { %1849 = vsyncpa [#allocation9], 1 }
 0x28b   :  { %1850 = vsyncpa [#allocation4], 1 }

</bundles_post_ra>
